<compile_context>
chip_gen: v6e
topology: v6e:2x2x1
jax: 0.10.0
libtpu: 0.0.40
codegen_flags: <defaults>
</compile_context>

<pallas_src>
import functools
import math

import jax
import jax.numpy as jnp
from jax.experimental import pallas as pl
from jax.experimental.pallas import tpu as pltpu


def _self_attention_kernel(x_ref, mask_ref,
                           wq_ref, bq_ref, wk_ref, bk_ref, wv_ref, bv_ref,
                           ctx_ref, probs_ref, *, compute_dtype):
    x = x_ref[0]                 # (S, D)  compute_dtype (bf16)
    mask = mask_ref[0, 0]        # (1, S)  f32 additive mask over key positions

    # One head's projections.  nn.Linear with pre-transposed, column-blocked
    # weights: y = x @ W^T[:, h*d:(h+1)*d] + b[h*d:(h+1)*d].
    # The 1/sqrt(att_size) scale is already folded into wq^T / bq.
    # bf16 operands, f32 accumulation; bias added in f32.
    q = jnp.dot(x, wq_ref[...], preferred_element_type=jnp.float32) + bq_ref[...]
    k = jnp.dot(x, wk_ref[...], preferred_element_type=jnp.float32) + bk_ref[...]
    v = jnp.dot(x, wv_ref[...], preferred_element_type=jnp.float32) + bv_ref[...]

    # Scores for this head: contract the head dim of q against the head dim of
    # k ('qd,kd->qk') -- no materialized k.T.
    scores = jax.lax.dot_general(
        q.astype(compute_dtype), k.astype(compute_dtype),
        dimension_numbers=(((1,), (1,)), ((), ())),
        preferred_element_type=jnp.float32)              # (S, S) f32, pre-scaled
    scores = scores + mask                               # broadcast over queries

    # Numerically-stable softmax along keys, in f32.  Exact reciprocal so the
    # returned attention_probs rows sum to 1 (approx recip saved ~nothing here).
    m = jnp.max(scores, axis=-1, keepdims=True)
    e = jnp.exp(scores - m)
    denom = jnp.sum(e, axis=-1, keepdims=True)
    probs = e * pl.reciprocal(denom, approx=False)       # (S, S) f32

    probs_ref[0, 0] = probs.astype(probs_ref.dtype)

    # Context for this head; the out_spec drops it into its (S, d) column slice
    # of the (B, S, D) output -- no head-merge transpose in-kernel.
    ctx = jnp.dot(probs.astype(compute_dtype), v.astype(compute_dtype),
                  preferred_element_type=jnp.float32)    # (S, d) f32
    ctx_ref[0] = ctx.astype(ctx_ref.dtype)


def self_attention(x, attention_mask, wq, bq, wk, bk, wv, bv, num_heads,
                   compute_dtype=jnp.bfloat16):
    B, S, D = x.shape
    assert D % num_heads == 0
    H = num_heads
    d = D // H
    # Per-head column blocks must be lane-aligned (last block dim % 128 == 0).
    assert d % 128 == 0, "att_size must be a multiple of 128 for per-head blocks"

    scale = 1.0 / math.sqrt(d)

    # Wrapper-side, loop-invariant prep:
    #  * transpose nn.Linear weights once (no in-kernel .T),
    #  * fold the softmax scale into the query projection weights/bias,
    #  * cast MXU operands to the compute dtype; biases stay f32.
    xc = x.astype(compute_dtype)
    wq_t = (wq.T * scale).astype(compute_dtype)
    wk_t = wk.T.astype(compute_dtype)
    wv_t = wv.T.astype(compute_dtype)
    bq2 = (bq * scale).reshape(1, D).astype(jnp.float32)
    bk2 = bk.reshape(1, D).astype(jnp.float32)
    bv2 = bv.reshape(1, D).astype(jnp.float32)
    mask = attention_mask.astype(jnp.float32)

    kernel = functools.partial(_self_attention_kernel,
                               compute_dtype=compute_dtype)

    ctx, probs = pl.pallas_call(
        kernel,
        grid=(B, H),
        in_specs=[
            # X / mask: constant across the inner head axis -> DMA'd once per b.
            pl.BlockSpec((1, S, D), lambda b, h: (b, 0, 0)),          # X
            pl.BlockSpec((1, 1, 1, S), lambda b, h: (b, 0, 0, 0)),    # mask
            # Per-head column blocks of the (pre-transposed) projection weights.
            pl.BlockSpec((D, d), lambda b, h: (0, h)),                # wq^T (scaled)
            pl.BlockSpec((1, d), lambda b, h: (0, h)),                # bq (scaled)
            pl.BlockSpec((D, d), lambda b, h: (0, h)),                # wk^T
            pl.BlockSpec((1, d), lambda b, h: (0, h)),                # bk
            pl.BlockSpec((D, d), lambda b, h: (0, h)),                # wv^T
            pl.BlockSpec((1, d), lambda b, h: (0, h)),                # bv
        ],
        out_specs=[
            # Each (b, h) step writes a disjoint (S, d) column slice of ctx and
            # a disjoint (S, S) tile of probs -> both axes are "parallel".
            pl.BlockSpec((1, S, d), lambda b, h: (b, 0, h)),
            pl.BlockSpec((1, 1, S, S), lambda b, h: (b, h, 0, 0)),
        ],
        out_shape=[
            jax.ShapeDtypeStruct((B, S, D), jnp.float32),
            jax.ShapeDtypeStruct((B, H, S, S), jnp.float32),
        ],
        compiler_params=pltpu.CompilerParams(
            dimension_semantics=("parallel", "parallel")),
    )(xc, mask, wq_t, bq2, wk_t, bk2, wv_t, bv2)
    return ctx, probs


def reference_self_attention(x, attention_mask, wq, bq, wk, bk, wv, bv, num_heads):
    B, S, D = x.shape
    d = D // num_heads

    def proj(w, b):
        y = jnp.einsum('bsd,ed->bse', x, w) + b
        return y.reshape(B, S, num_heads, d).transpose(0, 2, 1, 3)

    q, k, v = proj(wq, bq), proj(wk, bk), proj(wv, bv)
    scores = jnp.einsum('bhqd,bhkd->bhqk', q, k) / math.sqrt(d)
    scores = scores + attention_mask
    probs = jax.nn.softmax(scores, axis=-1)
    ctx = jnp.einsum('bhqk,bhkd->bhqd', probs, v)
    ctx = ctx.transpose(0, 2, 1, 3).reshape(B, S, D)
    return ctx, probs


if __name__ == "__main__":
    # Small, lane-aligned shapes: batch=2, seq_len=128, hidden=256, heads=2
    # (att_size = 128 so every per-head block is (8,128)-tileable and all
    # output stores are lane-dense).
    B, S, D, H = 2, 128, 256, 2
    key = jax.random.PRNGKey(0)
    kx, k1, k2, k3, k4, k5, k6 = jax.random.split(key, 7)

    x = jax.random.normal(kx, (B, S, D), dtype=jnp.float32)

    # Additive mask: last 16 key positions of batch element 1 masked out.
    valid = jnp.ones((B, S), dtype=jnp.float32).at[1, -16:].set(0.0)
    attention_mask = ((1.0 - valid) * -1e9).reshape(B, 1, 1, S)

    # Deterministic nn.Linear-style init (uniform in +/- 1/sqrt(fan_in)).
    bound = 1.0 / math.sqrt(D)
    wq = jax.random.uniform(k1, (D, D), jnp.float32, -bound, bound)
    bq = jax.random.uniform(k2, (D,), jnp.float32, -bound, bound)
    wk = jax.random.uniform(k3, (D, D), jnp.float32, -bound, bound)
    bk = jax.random.uniform(k4, (D,), jnp.float32, -bound, bound)
    wv = jax.random.uniform(k5, (D, D), jnp.float32, -bound, bound)
    bv = jax.random.uniform(k6, (D,), jnp.float32, -bound, bound)

    ctx, probs = self_attention(x, attention_mask, wq, bq, wk, bk, wv, bv, H)
    jax.block_until_ready((ctx, probs))

    ctx_ref, probs_ref = reference_self_attention(
        x, attention_mask, wq, bq, wk, bk, wv, bv, H)
    assert ctx.shape == (B, S, D) and probs.shape == (B, H, S, S)
    # Tolerances loosened vs. the f32 reference because the matmuls run in bf16
    # (with f32 accumulation); softmax itself is f32 with an exact reciprocal.
    assert jnp.allclose(ctx, ctx_ref, atol=3e-2, rtol=3e-2)
    assert jnp.allclose(probs, probs_ref, atol=2e-2, rtol=3e-2)

    print("KERNEL_OK")
</pallas_src>

<mosaic_0001>
module attributes {stable_mosaic.version = 11 : i64} {
  func.func @_self_attention_kernel(%arg0: i32, %arg1: i32, %arg2: memref<1x128x256xbf16, #tpu.memory_space<vmem>>, %arg3: memref<1x1x1x128xf32, #tpu.memory_space<vmem>>, %arg4: memref<256x128xbf16, #tpu.memory_space<vmem>>, %arg5: memref<1x128xf32, #tpu.memory_space<vmem>>, %arg6: memref<256x128xbf16, #tpu.memory_space<vmem>>, %arg7: memref<1x128xf32, #tpu.memory_space<vmem>>, %arg8: memref<256x128xbf16, #tpu.memory_space<vmem>>, %arg9: memref<1x128xf32, #tpu.memory_space<vmem>>, %arg10: memref<1x128x128xf32, #tpu.memory_space<vmem>>, %arg11: memref<1x1x128x128xf32, #tpu.memory_space<vmem>>) attributes {dimension_semantics = [#tpu.dimension_semantics<parallel>, #tpu.dimension_semantics<parallel>], iteration_bounds = array<i64: 2, 2>, scalar_prefetch = 0 : i64, scratch_operands = 0 : i64, tpu.core_type = #tpu.core_type<tc>, window_params = [{transform_indices = @transform_0, window_bounds = array<i64: 1, 128, 256>}, {transform_indices = @transform_1, window_bounds = array<i64: 1, 1, 1, 128>}, {transform_indices = @transform_2, window_bounds = array<i64: 256, 128>}, {transform_indices = @transform_3, window_bounds = array<i64: 1, 128>}, {transform_indices = @transform_4, window_bounds = array<i64: 256, 128>}, {transform_indices = @transform_5, window_bounds = array<i64: 1, 128>}, {transform_indices = @transform_6, window_bounds = array<i64: 256, 128>}, {transform_indices = @transform_7, window_bounds = array<i64: 1, 128>}, {transform_indices = @transform_8, window_bounds = array<i64: 1, 128, 128>}, {transform_indices = @transform_9, window_bounds = array<i64: 1, 1, 128, 128>}]} {
    %c0 = arith.constant 0 : index
    %c0_0 = arith.constant 0 : index
    %c0_1 = arith.constant 0 : index
    %0 = vector.load %arg2[%c0, %c0_0, %c0_1] : memref<1x128x256xbf16, #tpu.memory_space<vmem>>, vector<1x128x256xbf16>
    %1 = vector.shape_cast %0 : vector<1x128x256xbf16> to vector<128x256xbf16>
    %c0_2 = arith.constant 0 : index
    %c0_3 = arith.constant 0 : index
    %c0_4 = arith.constant 0 : index
    %c0_5 = arith.constant 0 : index
    %2 = vector.load %arg3[%c0_2, %c0_3, %c0_4, %c0_5] : memref<1x1x1x128xf32, #tpu.memory_space<vmem>>, vector<1x1x1x128xf32>
    %3 = vector.shape_cast %2 : vector<1x1x1x128xf32> to vector<1x128xf32>
    %c0_6 = arith.constant 0 : index
    %c0_7 = arith.constant 0 : index
    %4 = vector.load %arg4[%c0_6, %c0_7] : memref<256x128xbf16, #tpu.memory_space<vmem>>, vector<256x128xbf16>
    %cst = arith.constant dense<0.000000e+00> : vector<128x128xf32>
    %5 = tpu.matmul %1, %4, %cst {dimension_numbers = #tpu.dot_dimension_numbers<[1], [0], [0], [1], [0, 0, 1, 1], [], []>} : vector<128x256xbf16>, vector<256x128xbf16>, vector<128x128xf32> -> vector<128x128xf32>
    %c0_8 = arith.constant 0 : index
    %c0_9 = arith.constant 0 : index
    %6 = vector.load %arg5[%c0_8, %c0_9] : memref<1x128xf32, #tpu.memory_space<vmem>>, vector<1x128xf32>
    %7 = vector.broadcast %6 : vector<1x128xf32> to vector<128x128xf32>
    %8 = arith.addf %5, %7 : vector<128x128xf32>
    %c0_10 = arith.constant 0 : index
    %c0_11 = arith.constant 0 : index
    %9 = vector.load %arg6[%c0_10, %c0_11] : memref<256x128xbf16, #tpu.memory_space<vmem>>, vector<256x128xbf16>
    %cst_12 = arith.constant dense<0.000000e+00> : vector<128x128xf32>
    %10 = tpu.matmul %1, %9, %cst_12 {dimension_numbers = #tpu.dot_dimension_numbers<[1], [0], [0], [1], [0, 0, 1, 1], [], []>} : vector<128x256xbf16>, vector<256x128xbf16>, vector<128x128xf32> -> vector<128x128xf32>
    %c0_13 = arith.constant 0 : index
    %c0_14 = arith.constant 0 : index
    %11 = vector.load %arg7[%c0_13, %c0_14] : memref<1x128xf32, #tpu.memory_space<vmem>>, vector<1x128xf32>
    %12 = vector.broadcast %11 : vector<1x128xf32> to vector<128x128xf32>
    %13 = arith.addf %10, %12 : vector<128x128xf32>
    %c0_15 = arith.constant 0 : index
    %c0_16 = arith.constant 0 : index
    %14 = vector.load %arg8[%c0_15, %c0_16] : memref<256x128xbf16, #tpu.memory_space<vmem>>, vector<256x128xbf16>
    %cst_17 = arith.constant dense<0.000000e+00> : vector<128x128xf32>
    %15 = tpu.matmul %1, %14, %cst_17 {dimension_numbers = #tpu.dot_dimension_numbers<[1], [0], [0], [1], [0, 0, 1, 1], [], []>} : vector<128x256xbf16>, vector<256x128xbf16>, vector<128x128xf32> -> vector<128x128xf32>
    %c0_18 = arith.constant 0 : index
    %c0_19 = arith.constant 0 : index
    %16 = vector.load %arg9[%c0_18, %c0_19] : memref<1x128xf32, #tpu.memory_space<vmem>>, vector<1x128xf32>
    %17 = vector.broadcast %16 : vector<1x128xf32> to vector<128x128xf32>
    %18 = arith.addf %15, %17 : vector<128x128xf32>
    %19 = arith.truncf %8 : vector<128x128xf32> to vector<128x128xbf16>
    %20 = arith.truncf %13 : vector<128x128xf32> to vector<128x128xbf16>
    %cst_20 = arith.constant dense<0.000000e+00> : vector<128x128xf32>
    %21 = tpu.matmul %19, %20, %cst_20 {dimension_numbers = #tpu.dot_dimension_numbers<[1], [1], [0], [0], [0, 0, 1, 0], [], []>} : vector<128x128xbf16>, vector<128x128xbf16>, vector<128x128xf32> -> vector<128x128xf32>
    %22 = vector.broadcast %3 : vector<1x128xf32> to vector<128x128xf32>
    %23 = arith.addf %21, %22 : vector<128x128xf32>
    %cst_21 = arith.constant dense<0xFF800000> : vector<128xf32>
    %24 = vector.multi_reduction <maximumf>, %23, %cst_21 [1] : vector<128x128xf32> to vector<128xf32>
    %25 = vector.shape_cast %24 : vector<128xf32> to vector<128x1xf32>
    %26 = vector.broadcast %25 : vector<128x1xf32> to vector<128x128xf32>
    %27 = arith.subf %23, %26 : vector<128x128xf32>
    %28 = math.exp %27 : vector<128x128xf32>
    %cst_22 = arith.constant dense<0.000000e+00> : vector<128xf32>
    %29 = vector.multi_reduction <add>, %28, %cst_22 [1] : vector<128x128xf32> to vector<128xf32>
    %30 = vector.shape_cast %29 : vector<128xf32> to vector<128x1xf32>
    %31 = tpu.reciprocal %30 : vector<128x1xf32> -> vector<128x1xf32>
    %32 = vector.broadcast %31 : vector<128x1xf32> to vector<128x128xf32>
    %33 = arith.mulf %28, %32 : vector<128x128xf32>
    %c0_23 = arith.constant 0 : index
    %c0_24 = arith.constant 0 : index
    %c0_25 = arith.constant 0 : index
    %c0_26 = arith.constant 0 : index
    %34 = vector.load %arg11[%c0_23, %c0_24, %c0_25, %c0_26] : memref<1x1x128x128xf32, #tpu.memory_space<vmem>>, vector<1x1x128x128xf32>
    %35 = vector.shape_cast %34 : vector<1x1x128x128xf32> to vector<128x128xf32>
    %36 = vector.shape_cast %33 : vector<128x128xf32> to vector<1x1x128x128xf32>
    tpu.vector_store %arg11[%c0_23, %c0_24, %c0_25, %c0_26], %36 {strides = array<i32>} : memref<1x1x128x128xf32, #tpu.memory_space<vmem>>, vector<1x1x128x128xf32>,
    %37 = arith.truncf %33 : vector<128x128xf32> to vector<128x128xbf16>
    %38 = arith.truncf %18 : vector<128x128xf32> to vector<128x128xbf16>
    %cst_27 = arith.constant dense<0.000000e+00> : vector<128x128xf32>
    %39 = tpu.matmul %37, %38, %cst_27 {dimension_numbers = #tpu.dot_dimension_numbers<[1], [0], [0], [1], [0, 0, 1, 1], [], []>} : vector<128x128xbf16>, vector<128x128xbf16>, vector<128x128xf32> -> vector<128x128xf32>
    %c0_28 = arith.constant 0 : index
    %c0_29 = arith.constant 0 : index
    %c0_30 = arith.constant 0 : index
    %40 = vector.load %arg10[%c0_28, %c0_29, %c0_30] : memref<1x128x128xf32, #tpu.memory_space<vmem>>, vector<1x128x128xf32>
    %41 = vector.shape_cast %40 : vector<1x128x128xf32> to vector<128x128xf32>
    %42 = vector.shape_cast %39 : vector<128x128xf32> to vector<1x128x128xf32>
    tpu.vector_store %arg10[%c0_28, %c0_29, %c0_30], %42 {strides = array<i32>} : memref<1x128x128xf32, #tpu.memory_space<vmem>>, vector<1x128x128xf32>,
    return
  }
  func.func @transform_0(%arg0: i32, %arg1: i32) -> (i32, i32, i32) {
    %c0_i32 = arith.constant 0 : i32
    %c0_i32_0 = arith.constant 0 : i32
    %c0_i32_1 = arith.constant 0 : i32
    return %arg0, %c0_i32, %c0_i32_0 : i32, i32, i32
  }
  func.func @transform_1(%arg0: i32, %arg1: i32) -> (i32, i32, i32, i32) {
    %c0_i32 = arith.constant 0 : i32
    %c0_i32_0 = arith.constant 0 : i32
    %c0_i32_1 = arith.constant 0 : i32
    %c0_i32_2 = arith.constant 0 : i32
    return %arg0, %c0_i32, %c0_i32_0, %c0_i32_1 : i32, i32, i32, i32
  }
  func.func @transform_2(%arg0: i32, %arg1: i32) -> (i32, i32) {
    %c0_i32 = arith.constant 0 : i32
    %c0_i32_0 = arith.constant 0 : i32
    return %c0_i32, %arg1 : i32, i32
  }
  func.func @transform_3(%arg0: i32, %arg1: i32) -> (i32, i32) {
    %c0_i32 = arith.constant 0 : i32
    %c0_i32_0 = arith.constant 0 : i32
    return %c0_i32, %arg1 : i32, i32
  }
  func.func @transform_4(%arg0: i32, %arg1: i32) -> (i32, i32) {
    %c0_i32 = arith.constant 0 : i32
    %c0_i32_0 = arith.constant 0 : i32
    return %c0_i32, %arg1 : i32, i32
  }
  func.func @transform_5(%arg0: i32, %arg1: i32) -> (i32, i32) {
    %c0_i32 = arith.constant 0 : i32
    %c0_i32_0 = arith.constant 0 : i32
    return %c0_i32, %arg1 : i32, i32
  }
  func.func @transform_6(%arg0: i32, %arg1: i32) -> (i32, i32) {
    %c0_i32 = arith.constant 0 : i32
    %c0_i32_0 = arith.constant 0 : i32
    return %c0_i32, %arg1 : i32, i32
  }
  func.func @transform_7(%arg0: i32, %arg1: i32) -> (i32, i32) {
    %c0_i32 = arith.constant 0 : i32
    %c0_i32_0 = arith.constant 0 : i32
    return %c0_i32, %arg1 : i32, i32
  }
  func.func @transform_8(%arg0: i32, %arg1: i32) -> (i32, i32, i32) {
    %c0_i32 = arith.constant 0 : i32
    %c0_i32_0 = arith.constant 0 : i32
    return %arg0, %c0_i32, %arg1 : i32, i32, i32
  }
  func.func @transform_9(%arg0: i32, %arg1: i32) -> (i32, i32, i32, i32) {
    %c0_i32 = arith.constant 0 : i32
    %c0_i32_0 = arith.constant 0 : i32
    %c0_i32_1 = arith.constant 0 : i32
    return %arg0, %arg1, %c0_i32, %c0_i32_0 : i32, i32, i32, i32
  }
}

</mosaic_0001>

<bundles_post_ra>
// kernel: tpu_custom_call.1
= control target key start
LH: loop header
LB: loop body
LE: loop exit
PB: predicated region body
PF: predicated region fallthrough
CT: control target
= control target key end

     0   :  { %s3980_s0 = inlined_call_operand.hbm [shape: bf16[2,128,256], index: 0, kind: input, shape index: {}]   ;;  %s3981_s1 = inlined_call_operand.hbm [shape: f32[2,1,1,128], index: 1, kind: input, shape index: {}]   ;;  %s3982_s2 = inlined_call_operand.hbm [shape: bf16[256,256], index: 2, kind: input, shape index: {}]   ;;  %s3983_s3 = inlined_call_operand.vmem [shape: f32[1,256], index: 3, kind: input, shape index: {}]   ;;  %s3984_s4 = inlined_call_operand.hbm [shape: bf16[256,256], index: 4, kind: input, shape index: {}]   ;;  %s3985_s5 = inlined_call_operand.vmem [shape: f32[1,256], index: 5, kind: input, shape index: {}]   ;;  %s3986_s6 = inlined_call_operand.hbm [shape: bf16[256,256], index: 6, kind: input, shape index: {}]   ;;  %s3987_s7 = inlined_call_operand.vmem [shape: f32[1,256], index: 7, kind: input, shape index: {}]   ;;  %s3988_s8 = inlined_call_operand.hbm [shape: f32[2,128,256], index: 8, kind: output, shape index: {0}]   ;;  %s3989_s9 = inlined_call_operand.hbm [shape: f32[2,2,128,128], index: 9, kind: output, shape index: {1}]  }
   0x1   :  { %4013 = sst [smem:[#allocation38_spill]] %s3981_s1 }
   0x2   :  { %4014 = sst [smem:[#allocation39_spill]] %s3983_s3 }
   0x3   :  { %4015 = sst [smem:[#allocation40_spill]] %s3984_s4 }
   0x4   :  { %4016 = sst [smem:[#allocation41_spill]] %s3985_s5 }
   0x5   :  { %4017 = sst [smem:[#allocation42_spill]] %s3987_s7 }
   0x6   :  { %4018 = sst [smem:[#allocation43_spill]] %s3988_s8 }
   0x7   :  { %4019 = sst [smem:[#allocation44_spill]] %s3989_s9 }
   0x8   :  { %15 = vsyncpa [#allocation3], 0 }
   0x9   :  { %17 = vsyncpa [#allocation3 + $0x1], 0 }
   0xa   :  { %18 = vsyncpa [#allocation6], 0 }
   0xb   :  { %20 = vsyncpa [#allocation6 + $0x1], 0 }
   0xc   :  { %21 = vsyncpa [#allocation9], 0 }
   0xd   :  { %23 = vsyncpa [#allocation9 + $0x1], 0 }
   0xe   :  { %24 = vsyncpa [#allocation4], 0 }
   0xf   :  { %26 = vsyncpa [#allocation4 + $0x1], 0 }
  0x10   :  { %27 = vsyncpa [#allocation13], 0 }
  0x11   :  { %29 = vsyncpa [#allocation13 + $0x1], 0  ;;  %s3109_s30 = smov 0   ;;  %s3111_s10 = smov 0  }
  0x12   :  { %s3113_s11 = smov 0   ;;  %s3115_s12 = smov 0  }
  0x13   :  { %s3117_s13 = smov 0   ;;  %s3119_s14 = smov 0  }
  0x14   :  { %s3121_s15 = smov 0   ;;  %s3123_s16 = smov 0  }
  0x15   :  { %s3125_s17 = smov 0   ;;  %s3127_s18 = smov 0  }
  0x16   :  { %s3129_s19 = smov 0   ;;  %s3131_s20 = smov 0  }
  0x17   :  { %s3133_s21 = smov 0   ;;  %s3135_s22 = smov 0  }
  0x18 LB: > { %4020 = sst [smem:[#allocation20_spill]] %s2991_s30  ;;  %s3178_s23 = sadd.s32 4294967295, %s3043_s22   ;;  %s3043_s22 = sphi %s3135_s22, %s35_s22   ;;  %s3039_s21 = sphi %s3133_s21, %s4089_s21   ;;  %s3035_s20 = sphi %s3131_s20, %s4088_s20   ;;  %s3031_s19 = sphi %s3129_s19, %s4087_s19   ;;  %s3027_s18 = sphi %s3127_s18, %s4080_s18   ;;  %s3023_s17 = sphi %s3125_s17, %s4086_s17   ;;  %s3019_s16 = sphi %s3123_s16, %s4085_s16   ;;  %s3015_s15 = sphi %s3121_s15, %s4084_s15   ;;  %s3011_s14 = sphi %s3119_s14, %s4077_s14   ;;  %s3007_s13 = sphi %s3117_s13, %s4076_s13   ;;  %s3003_s12 = sphi %s3115_s12, %s4075_s12   ;;  %s2999_s11 = sphi %s3113_s11, %s4074_s11   ;;  %s2995_s10 = sphi %s3111_s10, %s4073_s10   ;;  %s2991_s30 = sphi %s3109_s30, %s4072_s30  }
  0x19   : > { %4021 = sst [smem:[#allocation21_spill]] %s2995_s10  ;;  %s44_s25 = sadd.s32 1, %s3035_s20 }
  0x1a   : > { %4022 = sst [smem:[#allocation22_spill]] %s2999_s11  ;;  %s47_s26 = sadd.s32 1, %s3039_s21 }
  0x1b   : > { %4023 = sst [smem:[#allocation23_spill]] %s3007_s13  ;;  %p45_p0 = scmp.ge.s32.totalorder %s44_s25, 2 }
  0x1c   : > { %4024 = sst [smem:[#allocation24_spill]] %s3011_s14  ;;  %s54_s27 = sadd.s32 1, %s3023_s17 }
  0x1d   : > { %4025 = sst [smem:[#allocation25_spill]] %s3023_s17  ;;  %p61_p1 = scmp.ne.s32.totalorder %s3023_s17, %s3019_s16 }
  0x1e   : > { %4026 = sst [smem:[#allocation26_spill]] %s3027_s18  ;;  %p62_p2 = scmp.eq.s32.totalorder %s3043_s22, 0 }
  0x1f   : > { %4027 = sst [smem:[#allocation27_spill]] %s3031_s19  ;;  %s4091_s25 = smov (%p45_p0, %s44_s25), 0 }
  0x20   : > { %4028 = sst [smem:[#allocation28_spill]] %s3035_s20  ;;  %s4093_s26 = smov (!%p45_p0, %s47_s26), %s3039_s21 }
  0x21   : > { %4029 = sst [smem:[#allocation29_spill]] %s3043_s22  ;;  %p3192_p3 = por %p62_p2, %p61_p1 }
  0x22   : > { %4030 = sst [smem:[#allocation30_spill]] %s4091_s25  ;;  %p67_p4 = scmp.ne.s32.totalorder %s3019_s16, %s3015_s15 }
  0x23   : > { %p49_p5 = scmp.ge.s32.totalorder %s4093_s26, 2  ;;  %p68_p6 = scmp.eq.s32.totalorder %s3178_s23, 0 }
  0x24   : > { %s103_s29 = ssub.s32 %s3035_s20, %s4091_s25  ;;  %s106_s24 = sadd.s32 1, %s3011_s14 }
  0x25   : > { %s4095_s26 = smov (%p49_p5, %s4093_s26), 0  ;;  %p3205_p7 = por %p68_p6, %p67_p4 }
  0x26   : > { %4032 = sst [smem:[#allocation31_spill]] %s4095_s26  ;;  %p104_p8 = scmp.eq.s32.totalorder %s103_s29, 0 }
  0x27   : > { %s51_s15 = ssub.s32 %s3039_s21, %s4095_s26  ;;  %p113_p9 = scmp.ne.s32.totalorder %s3011_s14, %s3007_s13 }
  0x28   : > { %p52_p10 = scmp.eq.s32.totalorder %s51_s15, 0  ;;  %p119_p11 = scmp.ne.s32.totalorder %s3007_s13, %s3003_s12 }
  0x29   : > { %s3216_s25 = scalar_select %p104_p8, %s3011_s14, %s106_s24  }
  0x2a   : > { %s3219_s9 = scalar_select %p52_p10, %s3023_s17, %s54_s27  }
  0x2b   : > { %4034 = sst [smem:[#allocation32_spill]] %s3216_s25  ;;  %p3223_p12 = por %p113_p9, %p62_p2 }
  0x2c   : > { %4035 = sst [smem:[#allocation33_spill]] %s3219_s9  ;;  %p3229_p13 = por %p119_p11, %p68_p6 }
  0x2d   : > { %s261_s7 = sor.u32 %s103_s29, %s51_s15  ;;  %s264_s12 = sadd.s32 1, %s2999_s11 }
  0x2e   : > { %s4037_s26 = scalar_select %p3229_p13, 1, 0 }
  0x2f   : > { %p262_p0 = scmp.eq.s32.totalorder %s261_s7, 0  ;;  %p274_p1 = scmp.ne.s32.totalorder %s2999_s11, %s2995_s10 }
  0x30   : > { %4038 = sst [smem:[#allocation34_spill]] %s4037_s26  ;;  %p275_p4 = scmp.eq.s32.totalorder %s3178_s23, 3 }
  0x31   : > { %p280_p5 = scmp.ne.s32.totalorder %s2995_s10, %s2991_s30  ;;  %s4042_s9 = sadd.s32 4294967294, %s3043_s22  }
  0x32   : > { %s3240_s24 = scalar_select %p262_p0, %s2999_s11, %s264_s12  }
  0x33   : > { %p3242_p2 = por %p275_p4, %p274_p1  ;;  %p281_p6 = scmp.eq.s32.totalorder %s4042_s9, 3 }
  0x34   : > { %4039 = sst [smem:[#allocation35_spill]] %s3240_s24  ;;  %p2460_p8 = scmp.lt.s32.totalorder %s3043_s22, 4 }
  0x35   : > { %s4040_s27 = scalar_select %p3242_p2, 1, 0 }
  0x36   : > { %p3249_p9 = por %p281_p6, %p280_p5  ;;  %s3254_s29 = sand.u32 1, %s3023_s17  }
  0x37   : > { %4041 = sst [smem:[#allocation36_spill]] %s4040_s27  ;;  %p3259_p10 = pnand %p2460_p8, %p3192_p3 }
  0x38   : > { %s4043_s25 = scalar_select %p3249_p9, 1, 0 }
  0x39   : > { %s4002_s12 = sand.u32 1, %s3043_s22   ;;  %s2043_s24 = sshll.u32 %s3039_s21, 4 }
  0x3a   : > { %4044 = sst [smem:[#allocation37_spill]] %s4043_s25  ;;  %s353_s27 = scalar_lea.vmem [#allocation5], %s3254_s29 }
  0x3b   : > { %s4046_s1 = sld [smem:[#allocation38_spill]]  ;;  %s360_s25 = sshll.u32 %s353_s27, 4  ;;  %s361_s25 = int_to_ptr.vmem [resolvable:$true] %s360_s25 }
  0x3c   : > { %p3271_p11 = pnand %p2460_p8, %p3223_p12  ;;  %s3277_s28 = scalar_lea.sflag [#allocation6], %s4002_s12 }
  0x3d   : > { %p4001_p3 = pneg %p3259_p10  ;;  %s2730_s7 = scalar_lea.vmem %s361_s25, 16 }
  0x3e   : > { %p2731_p0 = scmp.ne.s32.totalorder %s361_s25, %s2730_s7  ;;  %s3045_s11 = smov [#allocation5]  }
  0x40   : > { %p2733_p1 = pnand %p2731_p0, %p4001_p3 }
  0x41   : > { %s358_s30 = scalar_lea.hbm %s4046_s1, %s2043_s24  ;;  %s2735_s24 = sshll.u32 %s3045_s11, 4  ;;  %s2736_s24 = int_to_ptr.vmem [resolvable:$false] %s2735_s24 }
  0x42   : > { %p2734_p4 = pneg %p2733_p1  ;;  %s2737_s27 = scalar_lea.vmem %s2736_s24, 32 }
  0x43   : > { %p2738_p5 = scmp.lt.s32.totalorder %s361_s25, %s2736_s24  ;;  %p2739_p12 = scmp.lt.s32.totalorder %s2737_s27, %s2730_s7 }
  0x45   : > { %p2740_p6 = por %p2739_p12, %p2738_p5 }
  0x47   : > { %p2741_p8 = pnand %p2740_p6, %p2734_p4 }
  0x49   : > { %2744 = shalt.err (!%p2741_p8)
}
  0x4a   : > { %2443 = dma.hbm_to_vmem [thread:$0]  (!%p3259_p10), %s358_s30, 16, %s361_s25, %s3277_s28  }
  0x4b   : > { %p2050_p0 = scmp.ge.s32.totalorder %s3043_s22, 1  ;;  %p443_p1 = scmp.lt.s32.totalorder %s3043_s22, 5 }
  0x4c   : > { %s369_s19 = sand.u32 1, %s3011_s14   ;;  %s3297_s11 = sshll.u32 %s3035_s20, 6 }
  0x4d   : > { %p3290_p3 = pnand %p2050_p0, %p443_p1  ;;  %s3294_s7 = sshll.u32 %s369_s19, 7 }
  0x4e   : > { %s4049_s4 = sld [smem:[#allocation40_spill]]  ;;  %s397_s1 = scalar_lea.vmem [#allocation8], %s3294_s7 }
  0x4f   : > { %s403_s10 = sshll.u32 %s397_s1, 4  ;;  %s4050_s30 = sand.u32 1, %s3043_s22   ;;  %s404_s10 = int_to_ptr.vmem [resolvable:$true] %s403_s10 }
  0x50   : > { %s3306_s25 = scalar_lea.sflag [#allocation9], %s4050_s30  ;;  %p4012_p4 = pneg %p3271_p11 }
  0x51   : > { %s2758_s14 = scalar_lea.vmem %s404_s10, 2048  ;;  %s3046_s19 = smov [#allocation8]  }
  0x52   : > { %p2759_p5 = scmp.ne.s32.totalorder %s404_s10, %s2758_s14  ;;  %s2763_s20 = sshll.u32 %s3046_s19, 4  ;;  %s2764_s20 = int_to_ptr.vmem [resolvable:$false] %s2763_s20 }
  0x53   : > { %s2765_s3 = scalar_lea.vmem %s2764_s20, 4096  ;;  %p2766_p8 = scmp.lt.s32.totalorder %s404_s10, %s2764_s20 }
  0x54   : > { %s402_s12 = scalar_lea.hbm %s4049_s4, %s3297_s11  ;;  %p2761_p12 = pnand %p2759_p5, %p4012_p4 }
  0x55   : > { %p2767_p0 = scmp.lt.s32.totalorder %s2765_s3, %s2758_s14 }
  0x56   : > { %p2762_p6 = pneg %p2761_p12 }
  0x57   : > { %p2768_p1 = por %p2767_p0, %p2766_p8 }
  0x59   : > { %p2769_p9 = pnand %p2768_p1, %p2762_p6 }
  0x5b   : > { %2772 = shalt.err (!%p2769_p9)
}
  0x5c   : > { %s3047_s1 = smov 128   ;;  %s3048_s24 = smov 64  }
  0x5d   : > { %s3049_s27 = smov 4   ;;  %s2134_s30 = sshll.u32 %s3039_s21, 11 }
  0x5e   : > { %2449 = dma.hbm_to_vmem [thread:$0]  (!%p3271_p11), %s402_s12, 2048, %s404_s10, %s3306_s25, %s3047_s1, %s3048_s24, %s3049_s27  }
  0x5f   : > { %s4051_s20 = sshll.u32 %s3254_s29, 7  ;;  %s339_s22 = scalar_lea.hbm %s3980_s0, %s2134_s30 }
  0x60   : > { %s333_s3 = scalar_lea.vmem [#allocation2], %s4051_s20  ;;  %s330_s5 = scalar_lea.sflag [#allocation3], %s3254_s29 }
  0x61   : > { %s340_s14 = sshll.u32 %s333_s3, 4  ;;  %p4052_p5 = pneg %p3259_p10  ;;  %s341_s14 = int_to_ptr.vmem [resolvable:$true] %s340_s14 }
  0x62   : > { %s2786_s18 = scalar_lea.vmem %s341_s14, 2048  ;;  %s3050_s26 = smov [#allocation2]  }
  0x63   : > { %p2787_p9 = scmp.ne.s32.totalorder %s341_s14, %s2786_s18  ;;  %s2791_s13 = sshll.u32 %s3050_s26, 4  ;;  %s2792_s13 = int_to_ptr.vmem [resolvable:$false] %s2791_s13 }
  0x64   : > { %s2793_s10 = scalar_lea.vmem %s2792_s13, 4096  ;;  %p2794_p8 = scmp.lt.s32.totalorder %s341_s14, %s2792_s13 }
  0x65   : > { %p2789_p12 = pnand %p2787_p9, %p4052_p5  ;;  %p2795_p0 = scmp.lt.s32.totalorder %s2793_s10, %s2786_s18 }
  0x67   : > { %p2790_p6 = pneg %p2789_p12  ;;  %p2796_p1 = por %p2795_p0, %p2794_p8 }
  0x69   : > { %p2797_p4 = pnand %p2796_p1, %p2790_p6 }
  0x6b   : > { %2800 = shalt.err (!%p2797_p4)
}
  0x6c   : > { %s3051_s12 = smov 8   ;;  %s376_s26 = scalar_lea.hbm %s3982_s2, %s3297_s11 }
  0x6d   : > { %2440 = dma.hbm_to_vmem [thread:$0]  (!%p3259_p10), %s339_s22, 2048, %s341_s14, %s330_s5, %s3047_s1, %s3047_s1, %s3051_s12  }
  0x6e   : > { %s371_s30 = scalar_lea.vmem [#allocation7], %s3294_s7  ;;  %p4053_p4 = pneg %p3271_p11 }
  0x6f   : > { %s377_s20 = sshll.u32 %s371_s30, 4  ;;  %s3052_s18 = smov [#allocation7]   ;;  %s378_s20 = int_to_ptr.vmem [resolvable:$true] %s377_s20 }
  0x70   : > { %s2814_s13 = scalar_lea.vmem %s378_s20, 2048  ;;  %s2819_s15 = sshll.u32 %s3052_s18, 4  ;;  %s2820_s15 = int_to_ptr.vmem [resolvable:$false] %s2819_s15 }
  0x71   : > { %p2815_p9 = scmp.ne.s32.totalorder %s378_s20, %s2814_s13  ;;  %s2821_s3 = scalar_lea.vmem %s2820_s15, 4096 }
  0x72   : > { %p2822_p6 = scmp.lt.s32.totalorder %s378_s20, %s2820_s15  ;;  %p2823_p8 = scmp.lt.s32.totalorder %s2821_s3, %s2814_s13 }
  0x73   : > { %p2817_p5 = pnand %p2815_p9, %p4053_p4 }
  0x74   : > { %p2824_p10 = por %p2823_p8, %p2822_p6 }
  0x75   : > { %p2818_p12 = pneg %p2817_p5 }
  0x77   : > { %p2825_p0 = pnand %p2824_p10, %p2818_p12 }
  0x79   : > { %2828 = shalt.err (!%p2825_p0)
}
  0x7a   : > { %2446 = dma.hbm_to_vmem [thread:$0]  (!%p3271_p11), %s376_s26, 2048, %s378_s20, %s3277_s28, %s3047_s1, %s3048_s24, %s3049_s27  }
  0x7b   : > { %s428_s14 = scalar_lea.hbm %s3986_s6, %s3297_s11  ;;  %s423_s19 = scalar_lea.vmem [#allocation10], %s3294_s7 }
  0x7c   : > { %s429_s10 = sshll.u32 %s423_s19, 4  ;;  %p4054_p9 = pmov %p4053_p4  ;;  %s430_s10 = int_to_ptr.vmem [resolvable:$true] %s429_s10 }
  0x7d   : > { %s2842_s12 = scalar_lea.vmem %s430_s10, 2048  ;;  %s3053_s4 = smov [#allocation10]  }
  0x7e   : > { %p2843_p1 = scmp.ne.s32.totalorder %s430_s10, %s2842_s12  ;;  %s2847_s29 = sshll.u32 %s3053_s4, 4  ;;  %s2848_s29 = int_to_ptr.vmem [resolvable:$false] %s2847_s29 }
  0x7f   : > { %s2849_s30 = scalar_lea.vmem %s2848_s29, 4096  ;;  %p2850_p12 = scmp.lt.s32.totalorder %s430_s10, %s2848_s29 }
  0x80   : > { %p2845_p4 = pnand %p2843_p1, %p4054_p9  ;;  %p2851_p6 = scmp.lt.s32.totalorder %s2849_s30, %s2842_s12 }
  0x82   : > { %p2846_p5 = pneg %p2845_p4  ;;  %p2852_p8 = por %p2851_p6, %p2850_p12 }
  0x84   : > { %p2853_p10 = pnand %p2852_p8, %p2846_p5 }
  0x86   : > { %2856 = shalt.err (!%p2853_p10)
}
  0x87   : > { %2452 = dma.hbm_to_vmem [thread:$0]  (!%p3271_p11), %s428_s14, 2048, %s430_s10, %s3306_s25, %s3047_s1, %s3048_s24, %s3049_s27  }
  0x88   : > { %447 = sbr.rel (%p3290_p3) target bundleno = 1269 (0x4f5), region = 52  ;;  %s3364_s28 = sand.u32 (!%p3290_p3), 1, %s3019_s16  }
  0x89   : > { %s2051_s7 = sshll.u32 (!%p3290_p3), %s3364_s28, 7  ;;  %s450_s11 = scalar_lea.sflag (!%p3290_p3), [#allocation3], %s3364_s28 }
  0x8a   : > { %s3368_s26 = scalar_lea.vmem (!%p3290_p3), [#allocation2], %s2051_s7 }
  0x8d   : > { %2966 = dma.done.wait (%p3205_p7), %s450_s11, 2048  }
  0x8e   : > { %2968 = vsyncadd (%p3205_p7), %s450_s11, 4294965248  ;;  %s458_s17 = sand.u32 1, %s3178_s23   ;;  %s461_s25 = scalar_lea.vmem [#allocation5], %s3364_s28 }
  0x8f   : > { %s459_s9 = scalar_lea.sflag [#allocation6], %s458_s17 }
  0x90   : > { %2970 = dma.done.wait (%p3205_p7), %s459_s9, 16  }
  0x91   : > { %2972 = vsyncadd (%p3205_p7), %s459_s9, 4294967280  ;;  %s4055_s1 = sld [smem:[#allocation23_spill]] }
  0x97   : > { %s468_s27 = sand.u32 1, %s4055_s1  }
  0x98   : > { %s3381_s20 = sshll.u32 %s468_s27, 7 }
  0x99   : > { %s3384_s13 = scalar_lea.vmem [#allocation7], %s3381_s20 }
  0x9a   : > { %2974 = dma.done.wait (%p3229_p13), %s459_s9, 2048  }
  0x9b   : > { %2976 = vsyncadd (%p3229_p13), %s459_s9, 4294965248  ;;  %s476_s23 = scalar_lea.sflag [#allocation9], %s458_s17  ;;  %s3391_s18 = scalar_lea.vmem [#allocation8], %s3381_s20 }
  0x9c   : > { %2978 = dma.done.wait (%p3229_p13), %s476_s23, 4096  }
  0x9d   : > { %2980 = vsyncadd (%p3229_p13), %s476_s23, 4294963200  ;;  %v2581_v0 = vld [vmem:[%s3391_s18 + $0x78] sm:$0xff]   ;;  %v2583_v2 = vld [vmem:[%s3391_s18 + $0x70] sm:$0xff]   ;;  %s4057_s8 = sld [smem:[#allocation26_spill]]  ;;  %s3547_s29 = scalar_lea.vmem [#allocation10], %s3381_s20 }
  0x9e   : > { %v2582_v1 = vld [vmem:[%s3391_s18 + $0x38] sm:$0xff]   ;;  %2199 = vmatprep.subr.bf16.mxu1 %v2581_v0  ;;  %v2584_v3 = vld [vmem:[%s3391_s18 + $0x30] sm:$0xff]   ;;  %v2585_v4 = vld [vmem:[%s3391_s18 + $0x68] sm:$0xff]   ;;  %s4058_s22 = sld [smem:[#allocation41_spill]]  ;;  %s3054_s10 = smov [#allocation12]  }
  0x9f   : > { %2200 = vmatpush3.bf16.msra.mxu1 %v2582_v1  ;;  %v2586_v5 = vld [vmem:[%s3391_s18 + $0x28] sm:$0xff]   ;;  %v2587_v6 = vld [vmem:[%s3391_s18 + $0x60] sm:$0xff]   ;;  %v2589_v8 = vld [vmem:[%s3391_s18 + $0x58] sm:$0xff]   ;;  %s4059_s12 = sld [smem:[#allocation39_spill]] }
  0xa0   : > { %2201 = vmatprep.subr.bf16.mxu1 %v2583_v2  ;;  %v2588_v7 = vld [vmem:[%s3391_s18 + $0x20] sm:$0xff]   ;;  %v2590_v9 = vld [vmem:[%s3391_s18 + $0x18] sm:$0xff]   ;;  %v2591_v10 = vld [vmem:[%s3391_s18 + $0x50] sm:$0xff]   ;;  %s4060_s7 = sld [smem:[#allocation42_spill]] }
  0xa1   : > { %v3409_v11 = vld [vmem:[%s3368_s26 + $0x4] ss:$8 sps:$4 sm:$0xff]   ;;  %v2592_v12 = vld [vmem:[%s3391_s18 + $0x10] sm:$0xff]   ;;  %v2618_v17 = vld [vmem:[%s3384_s13 + $0x78] sm:$0xff]   ;;  %s4062_s1 = sld [smem:[#allocation27_spill]] }
  0xa2   : > { %1062 = vmatprep.mubr.bf16.mxu1 %v3409_v11  ;;  %830 = vmatprep.mubr.bf16.mxu0 %v3409_v11  ;;  %v2593_v13 = vld [vmem:[%s3391_s18 + $0x48] sm:$0xff]   ;;  %v2595_v15 = vld [vmem:[%s3391_s18 + $0x40] sm:$0xff]   ;;  %v2619_v18 = vld [vmem:[%s3384_s13 + $0x38] sm:$0xff]   ;;  %s4064_s3 = sld [smem:[#allocation44_spill]] }
  0xa3   : > { %2202 = vmatpush3.bf16.msra.mxu1 %v2584_v3  ;;  %v2594_v14 = vld [vmem:[%s3391_s18 + $0x8] sm:$0xff]   ;;  %v2596_v16 = vld [vmem:[%s3391_s18] sm:$0xff]   ;;  %2135 = vmatprep.subr.bf16.mxu0 %v2618_v17  ;;  %v2620_v19 = vld [vmem:[%s3384_s13 + $0x70] sm:$0xff]   ;;  %p556_p7 = scmp.lt.s32.totalorder %s4057_s8, 1  ;;  %s2129_s20 = sshll.u32 %s4057_s8, 4 }
  0xa4   : > { %2203 = vmatprep.subr.bf16.mxu1 %v2585_v4  ;;  %v3422_v20 = vld [vmem:[%s3368_s26] ss:$8 sps:$4 sm:$0xff]   ;;  %2136 = vmatpush3.bf16.msra.mxu0 %v2619_v18  ;;  %v3425_v21 = vld [vmem:[%s3368_s26 + $0x14] ss:$8 sps:$4 sm:$0xff]   ;;  %v3434_v26 = vld [vmem:[%s3368_s26 + $0x10] ss:$8 sps:$4 sm:$0xff]  }
  0xa5   : > { %2137 = vmatprep.subr.bf16.mxu0 %v2620_v19  ;;  %v2623_v22 = vld [vmem:[%s3384_s13 + $0x30] sm:$0xff]   ;;  %v2625_v23 = vld [vmem:[%s3384_s13 + $0x68] sm:$0xff]   ;;  %v2627_v25 = vld [vmem:[%s3384_s13 + $0x60] sm:$0xff]   ;;  %s3512_s15 = scalar_select %p556_p7, %s4057_s8, 1 }
  0xa6   : > { %v2626_v24 = vld [vmem:[%s3384_s13 + $0x28] sm:$0xff]   ;;  %v2628_v27 = vld [vmem:[%s3384_s13 + $0x20] sm:$0xff]   ;;  %v2629_v28 = vld [vmem:[%s3384_s13 + $0x58] sm:$0xff]  }
  0xa7   : > { %2204 = vmatpush3.bf16.msra.mxu1 %v2586_v5  ;;  %v3439_v29 = vld [vmem:[%s3368_s26 + $0x24] ss:$8 sps:$4 sm:$0xff]   ;;  %v2630_v30 = vld [vmem:[%s3384_s13 + $0x18] sm:$0xff]   ;;  %v2631_v31 = vld [vmem:[%s3384_s13 + $0x50] sm:$0xff]   ;;  %s561_s14 = scalar_lea.vmem %s4058_s22, %s3512_s15  ;;  %s558_s4 = scalar_lea.vmem %s4059_s12, %s3512_s15 }
  0xa8   : > { %2205 = vmatprep.subr.bf16.mxu1 %v2587_v6  ;;  %2138 = vmatpush3.bf16.msra.mxu0 %v2623_v22  ;;  %v2632_v32 = vld [vmem:[%s3384_s13 + $0x10] sm:$0xff]   ;;  %v3447_v33 = vld [vmem:[%s3368_s26 + $0x20] ss:$8 sps:$4 sm:$0xff]   ;;  %v3462_v40 = vld [vmem:[%s3368_s26 + $0x44] ss:$8 sps:$4 sm:$0xff]   ;;  %s564_s11 = scalar_lea.vmem %s4060_s7, %s3512_s15  ;;  %s2127_s27 = sshll.u32 %s4062_s1, 5 }
  0xa9   : > { %2139 = vmatprep.subr.bf16.mxu0 %v2625_v23  ;;  %v2633_v34 = vld [vmem:[%s3384_s13 + $0x48] sm:$0xff]   ;;  %v3451_v35 = vld [vmem:[%s3368_s26 + $0x34] ss:$8 sps:$4 sm:$0xff]   ;;  %v2635_v37 = vld [vmem:[%s3384_s13 + $0x40] sm:$0xff]   ;;  %s2861_s12 = sshll.u32 %s3054_s10, 4  ;;  %s2862_s12 = int_to_ptr.vmem [resolvable:$false] %s2861_s12 }
  0xaa   : > { %v2634_v36 = vld [vmem:[%s3384_s13 + $0x8] sm:$0xff]   ;;  %v2636_v38 = vld [vmem:[%s3384_s13] sm:$0xff]   ;;  %v3472_v42 = vld [vmem:[%s3368_s26 + $0x54] ss:$8 sps:$4 sm:$0xff]   ;;  %s1802_s13 = sadd.s32 %s2129_s20, %s2127_s27 }
  0xab   : > { %2206 = vmatpush3.bf16.msra.mxu1 %v2588_v7  ;;  %v3459_v39 = vld [vmem:[%s3368_s26 + $0x30] ss:$8 sps:$4 sm:$0xff]   ;;  %v3469_v41 = vld [vmem:[%s3368_s26 + $0x40] ss:$8 sps:$4 sm:$0xff]   ;;  %v3482_v44 = vld [vmem:[%s3368_s26 + $0x64] ss:$8 sps:$4 sm:$0xff]  }
  0xac   : > { %2207 = vmatprep.subr.bf16.mxu1 %v2589_v8  ;;  %2140 = vmatpush3.bf16.msra.mxu0 %v2626_v24  ;;  %v3479_v43 = vld [vmem:[%s3368_s26 + $0x50] ss:$8 sps:$4 sm:$0xff]   ;;  %v3489_v45 = vld [vmem:[%s3368_s26 + $0x60] ss:$8 sps:$4 sm:$0xff]   ;;  %v3492_v46 = vld [vmem:[%s3368_s26 + $0x74] ss:$8 sps:$4 sm:$0xff]  }
  0xad   : > { %2141 = vmatprep.subr.bf16.mxu0 %v2627_v25  ;;  %v3499_v47 = vld [vmem:[%s3368_s26 + $0x70] ss:$8 sps:$4 sm:$0xff]   ;;  %v3518_v52 = vld [vmem:[%s561_s14] ss:$0 sm:$0xff]  ;;  %s4061_s26 = sld [smem:[#allocation21_spill]]  ;;  %s2131_s23 = sshll.u32 %s1802_s13, 7 }
  0xae   : > { %v3542_v17 = vld [vmem:[%s558_s4] ss:$0 sm:$0xff]  ;;  %s3841_s5 = scalar_lea.hbm %s4064_s3, %s2131_s23  ;;  %s2863_s4 = scalar_lea.vmem %s2862_s12, 4096 }
  0xaf   : > { %2208 = vmatpush3.bf16.msra.mxu1 %v2590_v9  ;;  %v2637_v23 = vld [vmem:[%s3547_s29 + $0x78] sm:$0xff]  }
  0xb0   : > { %2209 = vmatprep.subr.bf16.mxu1 %v2591_v10  ;;  %2142 = vmatpush3.bf16.msra.mxu0 %v2628_v27  ;;  %v2638_v24 = vld [vmem:[%s3547_s29 + $0x38] sm:$0xff]  }
  0xb1   : > { %2143 = vmatprep.subr.bf16.mxu0 %v2629_v28  ;;  %v2639_v28 = vld [vmem:[%s3547_s29 + $0x70] sm:$0xff]  }
  0xb3   : > { %2210 = vmatpush3.bf16.msra.mxu1 %v2592_v12  ;;  %s3795_s17 = sand.u32 1, %s4061_s26  }
  0xb4   : > { %2211 = vmatprep.subr.bf16.mxu1 %v2593_v13  ;;  %2144 = vmatpush3.bf16.msra.mxu0 %v2630_v30  ;;  %s2055_s9 = sshll.u32 %s3795_s17, 7  ;;  %s1773_s14 = scalar_lea.sflag [#allocation13], %s3795_s17 }
  0xb5   : > { %2145 = vmatprep.subr.bf16.mxu0 %v2631_v31 }
  0xb7   : > { %2212 = vmatpush3.bf16.msra.mxu1 %v2594_v14 }
  0xb8   : > { %2213 = vmatprep.subr.bf16.mxu1 %v2595_v15  ;;  %2146 = vmatpush3.bf16.msra.mxu0 %v2632_v32  ;;  %v2640_v32 = vld [vmem:[%s3547_s29 + $0x30] sm:$0xff]  }
  0xb9   : > { %2147 = vmatprep.subr.bf16.mxu0 %v2633_v34 }
  0xbb   : > { %2214 = vmatpush3.bf16.msra.mxu1 %v2596_v16 }
  0xbc   : > { %2148 = vmatpush3.bf16.msra.mxu0 %v2634_v36  ;;  %v2641_v36 = vld [vmem:[%s3547_s29 + $0x68] sm:$0xff]  }
  0xbd   : > { %2149 = vmatprep.subr.bf16.mxu0 %v2635_v37 }
  0xbe   : > { %1063 = vmatmul.mubr.bf16.vlgmr.msra.gmra.mxu1 %v3422_v20 }
  0xbf   : > { %1070 = vmatprep.mubr.bf16.mxu1 %v3425_v21 }
  0xc0   : > { %2150 = vmatpush3.bf16.msra.mxu0 %v2636_v38 }
  0xc1   : > { %2263 = vmatprep.subr.bf16.mxu0 %v2637_v23 }
  0xc3   : > { %831 = vmatmul.mubr.bf16.vlgmr.msra.gmra.mxu0 %v3422_v20 }
  0xc4   : > { %838 = vmatprep.mubr.bf16.mxu0 %v3425_v21  ;;  %2264 = vmatpush3.bf16.msra.mxu0 %v2638_v24 }
  0xc5   : > { %2265 = vmatprep.subr.bf16.mxu0 %v2639_v28 }
  0xc6   : > { %1071 = vmatmul.mubr.bf16.gmra.mxu1 %v3434_v26 }
  0xc7   : > { %1078 = vmatprep.mubr.bf16.mxu1 %v3439_v29 }
  0xc8   : > { %2266 = vmatpush3.bf16.msra.mxu0 %v2640_v32 }
  0xc9   : > { %2267 = vmatprep.subr.bf16.mxu0 %v2641_v36 }
  0xcb   : > { %839 = vmatmul.mubr.bf16.gmra.mxu0 %v3434_v26 }
  0xcc   : > { %846 = vmatprep.mubr.bf16.mxu0 %v3439_v29 }
  0xce   : > { %1079 = vmatmul.mubr.bf16.gmra.mxu1 %v3447_v33 }
  0xcf   : > { %1086 = vmatprep.mubr.bf16.mxu1 %v3451_v35 }
  0xd3   : > { %847 = vmatmul.mubr.bf16.gmra.mxu0 %v3447_v33 }
  0xd4   : > { %854 = vmatprep.mubr.bf16.mxu0 %v3451_v35 }
  0xd6   : > { %1087 = vmatmul.mubr.bf16.gmra.mxu1 %v3459_v39 }
  0xd7   : > { %1094 = vmatprep.mubr.bf16.mxu1 %v3462_v40 }
  0xdb   : > { %855 = vmatmul.mubr.bf16.gmra.mxu0 %v3459_v39 }
  0xdc   : > { %862 = vmatprep.mubr.bf16.mxu0 %v3462_v40 }
  0xde   : > { %1095 = vmatmul.mubr.bf16.gmra.mxu1 %v3469_v41 }
  0xdf   : > { %1102 = vmatprep.mubr.bf16.mxu1 %v3472_v42 }
  0xe3   : > { %863 = vmatmul.mubr.bf16.gmra.mxu0 %v3469_v41 }
  0xe4   : > { %870 = vmatprep.mubr.bf16.mxu0 %v3472_v42 }
  0xe6   : > { %1103 = vmatmul.mubr.bf16.gmra.mxu1 %v3479_v43 }
  0xe7   : > { %1110 = vmatprep.mubr.bf16.mxu1 %v3482_v44 }
  0xeb   : > { %871 = vmatmul.mubr.bf16.gmra.mxu0 %v3479_v43 }
  0xec   : > { %878 = vmatprep.mubr.bf16.mxu0 %v3482_v44 }
  0xee   : > { %1111 = vmatmul.mubr.bf16.gmra.mxu1 %v3489_v45 }
  0xef   : > { %1118 = vmatprep.mubr.bf16.mxu1 %v3492_v46 }
  0xf3   : > { %879 = vmatmul.mubr.bf16.gmra.mxu0 %v3489_v45 }
  0xf4   : > { %886 = vmatprep.mubr.bf16.mxu0 %v3492_v46 }
  0xf6   : > { %1119 = vmatmul.mubr.bf16.gmra.mxu1 %v3499_v47 }
  0xfb   : > { %887 = vmatmul.mubr.bf16.gmra.mxu0 %v3499_v47 }
  0xfc   : > { %1294 = vmatprep.mubr.bf16.mxu0 %v3409_v11 }
 0x17e   : > { %v2215_v48 = vpop.f32.mrf.mxu1 }
 0x180   : > { %v2216_v49 = vpop.f32.mrf.mxu1 }
 0x181   : > { %v2217_v50 = vadd.f32 %v2216_v49, %v2215_v48 }
 0x182   : > { %v2218_v51 = vpop.f32.mrf.mxu1 }
 0x183   : > { %v1065_v56 = vadd.f32 %v2217_v50, %v3518_v52  ;;  %v2151_v13 = vpop.f32.mrf.mxu0  ;;  %v2642_v50 = vld [vmem:[%s3547_s29 + $0x28] sm:$0xff]  }
 0x184   : > { %v2219_v53 = vpop.f32.mrf.mxu1  ;;  %2268 = vmatpush3.bf16.msra.mxu0 %v2642_v50 }
 0x185   : > { %v2220_v54 = vadd.f32 %v2219_v53, %v2218_v51  ;;  %v2152_v16 = vpop.f32.mrf.mxu0  ;;  %v2643_v53 = vld [vmem:[%s3547_s29 + $0x60] sm:$0xff]  }
 0x186   : > { %v2221_v55 = vpop.f32.mrf.mxu1  ;;  %v2153_v18 = vadd.f32 %v2152_v16, %v2151_v13  ;;  %2269 = vmatprep.subr.bf16.mxu0 %v2643_v53  ;;  %v2651_v13 = vld [vmem:[%s3547_s29 + $0x40] sm:$0xff]  }
 0x187   : > { %v1068_v57 = vadd.f32 %v2220_v54, %v3518_v52  ;;  %v2154_v22 = vpop.f32.mrf.mxu0 }
 0x188   : > { %v2222_v58 = vpop.f32.mrf.mxu1  ;;  %v833_v30 = vadd.f32 %v2153_v18, %v3542_v17 }
 0x189   : > { %v2223_v59 = vadd.f32 %v2222_v58, %v2221_v55  ;;  %v3522_v60 = vpack.c.bf16 %v1068_v57, %v1065_v56  ;;  %v2155_v27 = vpop.f32.mrf.mxu0  ;;  %v2644_v56 = vld [vmem:[%s3547_s29 + $0x20] sm:$0xff]   ;;  %v2645_v58 = vld [vmem:[%s3547_s29 + $0x58] sm:$0xff]  }
 0x18a   : > { %v2224_v61 = vpop.f32.mrf.mxu1  ;;  %v2156_v31 = vadd.f32 %v2155_v27, %v2154_v22  ;;  %2270 = vmatpush3.bf16.msra.mxu0 %v2644_v56  ;;  %v2652_v22 = vld [vmem:[%s3547_s29] sm:$0xff]  }
 0x18b   : > { %v1073_v1 = vadd.f32 %v2223_v59, %v3518_v52  ;;  %v3562_v48 = vpop.f32.mrf.mxu0  ;;  %2271 = vmatprep.subr.bf16.mxu0 %v2645_v58 }
 0x18c   : > { %v2225_v62 = vpop.f32.mrf.mxu1  ;;  %v836_v37 = vadd.f32 %v2156_v31, %v3542_v17 }
 0x18d   : > { %v2226_v63 = vadd.f32 %v2225_v62, %v2224_v61  ;;  %v3568_v55 = vpop.f32.mrf.mxu0  ;;  %v2646_v62 = vld [vmem:[%s3547_s29 + $0x18] sm:$0xff]  }
 0x18e   : > { %v2227_v0 = vpop.f32.mrf.mxu1  ;;  %v1359_v49 = vpack.c.bf16 %v836_v37, %v833_v30  ;;  %2272 = vmatpush3.bf16.msra.mxu0 %v2646_v62 }
 0x18f   : > { %v1076_v2 = vadd.f32 %v2226_v63, %v3518_v52  ;;  %v3572_v61 = vpop.f32.mrf.mxu0 }
 0x190   : > { %v2228_v3 = vpop.f32.mrf.mxu1  ;;  %2375 = vmatprep.mubr.bf16.mxu1 %v1359_v49 }
 0x191   : > { %v2229_v4 = vadd.f32 %v2228_v3, %v2227_v0  ;;  %v3526_v5 = vpack.c.bf16 %v1076_v2, %v1073_v1  ;;  %v2647_v0 = vld [vmem:[%s3547_s29 + $0x50] sm:$0xff]   ;;  %v3576_v2 = vpop.f32.mrf.mxu0 }
 0x192   : > { %v2230_v6 = vpop.f32.mrf.mxu1  ;;  %v2648_v3 = vld [vmem:[%s3547_s29 + $0x10] sm:$0xff]   ;;  %2273 = vmatprep.subr.bf16.mxu0 %v2647_v0 }
 0x193   : > { %v1081_v10 = vadd.f32 %v2229_v4, %v3518_v52  ;;  %2274 = vmatpush3.bf16.msra.mxu0 %v2648_v3 }
 0x194   : > { %v2231_v7 = vpop.f32.mrf.mxu1 }
 0x195   : > { %v2232_v8 = vadd.f32 %v2231_v7, %v2230_v6  ;;  %v2649_v6 = vld [vmem:[%s3547_s29 + $0x48] sm:$0xff]  }
 0x196   : > { %v3528_v9 = vpop.f32.mrf.mxu1  ;;  %2275 = vmatprep.subr.bf16.mxu0 %v2649_v6 }
 0x197   : > { %v1084_v11 = vadd.f32 %v2232_v8, %v3518_v52  ;;  %v3580_v8 = vpop.f32.mrf.mxu0 }
 0x198   : > { %v3532_v12 = vpop.f32.mrf.mxu1 }
 0x199   : > { %v3538_v14 = vpack.c.bf16 %v1084_v11, %v1081_v10  ;;  %v2650_v10 = vld [vmem:[%s3547_s29 + $0x8] sm:$0xff]   ;;  %v3584_v18 = vpop.f32.mrf.mxu0 }
 0x19a   : > { %v3540_v15 = vpop.f32.mrf.mxu1  ;;  %2276 = vmatpush3.bf16.msra.mxu0 %v2650_v10 }
 0x19b   : > { %2277 = vmatprep.subr.bf16.mxu0 %v2651_v13  ;;  %v3587_v27 = vpop.f32.mrf.mxu0 }
 0x19c   : > { %v3544_v19 = vpop.f32.mrf.mxu1 }
 0x19d   : > { %v3589_v37 = vpop.f32.mrf.mxu0  ;;  %v2238_v10 = vadd.f32 %v3544_v19, %v3540_v15 }
 0x19e   : > { %v3551_v25 = vpop.f32.mrf.mxu1  ;;  %2278 = vmatpush3.bf16.msra.mxu0 %v2652_v22 }
 0x19f   : > { %v3597_v62 = vpop.f32.mrf.mxu0 }
 0x1a0   : > { %v3556_v34 = vpop.f32.mrf.mxu1 }
 0x1a1   : > { %1295 = vmatmul.mubr.bf16.vlgmr.msra.gmra.mxu0 %v3422_v20  ;;  %v3599_v20 = vpop.f32.mrf.mxu0 }
 0x1a2   : > { %v3560_v38 = vpop.f32.mrf.mxu1  ;;  %1302 = vmatprep.mubr.bf16.mxu0 %v3425_v21 }
 0x1a3   : > { %v2172_v6 = vpop.f32.mrf.mxu0 }
 0x1a4   : > { %v3565_v51 = vpop.f32.mrf.mxu1 }
 0x1a6   : > { %v2245_v54 = vpop.f32.mrf.mxu1 }
 0x1a8   : > { %v2246_v57 = vpop.f32.mrf.mxu1 }
 0x1a9   : > { %v2247_v3 = vadd.f32 %v2246_v57, %v2245_v54  ;;  %1303 = vmatmul.mubr.bf16.gmra.mxu0 %v3434_v26  ;;  %v2241_v54 = vadd.f32 %v3556_v34, %v3551_v25  ;;  %v2173_v57 = vpop.f32.mrf.mxu0 }
 0x1aa   : > { %v2248_v59 = vpop.f32.mrf.mxu1  ;;  %1310 = vmatprep.mubr.bf16.mxu0 %v3439_v29 }
 0x1ab   : > { %v1105_v21 = vadd.f32 %v2247_v3, %v3518_v52  ;;  %v1097_v29 = vadd.f32 %v2241_v54, %v3518_v52 }
 0x1ac   : > { %v2249_v63 = vpop.f32.mrf.mxu1 }
 0x1ad   : > { %v2250_v0 = vadd.f32 %v2249_v63, %v2248_v59  ;;  %v2175_v63 = vpop.f32.mrf.mxu0 }
 0x1ae   : > { %v2251_v1 = vpop.f32.mrf.mxu1 }
 0x1af   : > { %v2176_v25 = vpop.f32.mrf.mxu0 }
 0x1b0   : > { %v2252_v4 = vpop.f32.mrf.mxu1 }
 0x1b1   : > { %v2253_v32 = vadd.f32 %v2252_v4, %v2251_v1  ;;  %v1108_v4 = vadd.f32 %v2250_v0, %v3518_v52  ;;  %1311 = vmatmul.mubr.bf16.gmra.mxu0 %v3447_v33  ;;  %v1092_v33 = vadd.f32 %v2238_v10, %v3518_v52  ;;  %v2178_v34 = vpop.f32.mrf.mxu0 }
 0x1b2   : > { %v2254_v7 = vpop.f32.mrf.mxu1  ;;  %1318 = vmatprep.mubr.bf16.mxu0 %v3451_v35 }
 0x1b3   : > { %v1113_v56 = vadd.f32 %v2253_v32, %v3518_v52  ;;  %v1372_v59 = vpack.c.bf16 %v1108_v4, %v1105_v21  ;;  %v2179_v15 = vpop.f32.mrf.mxu0 }
 0x1b4   : > { %v2255_v11 = vpop.f32.mrf.mxu1  ;;  %v2180_v13 = vadd.f32 %v2179_v15, %v2178_v34 }
 0x1b5   : > { %v2256_v28 = vadd.f32 %v2255_v11, %v2254_v7  ;;  %v2244_v7 = vadd.f32 %v3565_v51, %v3560_v38  ;;  %v2235_v51 = vadd.f32 %v3532_v12, %v3528_v9  ;;  %v2181_v9 = vpop.f32.mrf.mxu0  ;;  %v2165_v12 = vadd.f32 %v3584_v18, %v3580_v8 }
 0x1b6   : > { %v2257_v16 = vpop.f32.mrf.mxu1  ;;  %v2177_v8 = vadd.f32 %v2176_v25, %v2175_v63 }
 0x1b7   : > { %v1116_v49 = vadd.f32 %v2256_v28, %v3518_v52  ;;  %v1100_v26 = vadd.f32 %v2244_v7, %v3518_v52  ;;  %v1089_v35 = vadd.f32 %v2235_v51, %v3518_v52 }
 0x1b8   : > { %v2258_v23 = vpop.f32.mrf.mxu1 }
 0x1b9   : > { %v2259_v30 = vadd.f32 %v2258_v23, %v2257_v16  ;;  %v1373_v1 = vpack.c.bf16 %v1116_v49, %v1113_v56  ;;  %v1371_v38 = vpack.c.bf16 %v1100_v26, %v1097_v29  ;;  %1319 = vmatmul.mubr.bf16.gmra.mxu0 %v3459_v39  ;;  %v1370_v11 = vpack.c.bf16 %v1092_v33, %v1089_v35  ;;  %v2182_v39 = vpop.f32.mrf.mxu0 }
 0x1ba   : > { %v2260_v24 = vpop.f32.mrf.mxu1  ;;  %1326 = vmatprep.mubr.bf16.mxu0 %v3462_v40  ;;  %v865_v23 = vadd.f32 %v2177_v8, %v3542_v17  ;;  %v2183_v28 = vadd.f32 %v2182_v39, %v2181_v9 }
 0x1bb   : > { %v1121_v50 = vadd.f32 %v2259_v30, %v3518_v52  ;;  %v2184_v40 = vpop.f32.mrf.mxu0 }
 0x1bc   : > { %v2261_v31 = vpop.f32.mrf.mxu1 }
 0x1bd   : > { %v2262_v36 = vadd.f32 %v2261_v31, %v2260_v24  ;;  %v868_v24 = vadd.f32 %v2180_v13, %v3542_v17 }
 0x1bf   : > { %v1124_v53 = vadd.f32 %v2262_v36, %v3518_v52  ;;  %v2185_v52 = vpop.f32.mrf.mxu0 }
 0x1c0   : > { %v2186_v30 = vadd.f32 %v2185_v52, %v2184_v40 }
 0x1c1   : > { %v1374_v58 = vpack.c.bf16 %v1124_v53, %v1121_v50  ;;  %1327 = vmatmul.mubr.bf16.gmra.mxu0 %v3469_v41  ;;  %v2187_v41 = vpop.f32.mrf.mxu0  ;;  %v873_v50 = vadd.f32 %v2183_v28, %v3542_v17 }
 0x1c2   : > { %1334 = vmatprep.mubr.bf16.mxu0 %v3472_v42  ;;  %v876_v53 = vadd.f32 %v2186_v30, %v3542_v17 }
 0x1c3   : > { %2359 = vmatprep.subr.bf16.mxu1 %v1374_v58  ;;  %v2188_v42 = vpop.f32.mrf.mxu0 }
 0x1c4   : > { %2360 = vmatpush3.bf16.xpose.msra.mxu1 %v1374_v58  ;;  %v2189_v32 = vadd.f32 %v2188_v42, %v2187_v41  ;;  %v1364_v3 = vpack.c.bf16 %v876_v53, %v873_v50 }
 0x1c5   : > { %2361 = vmatprep.subr.bf16.mxu1 %v1373_v1 }
 0x1c6   : > { %v881_v56 = vadd.f32 %v2189_v32, %v3542_v17 }
 0x1c9   : > { %1335 = vmatmul.mubr.bf16.gmra.mxu0 %v3479_v43  ;;  %v2159_v43 = vadd.f32 %v3568_v55, %v3562_v48 }
 0x1ca   : > { %1342 = vmatprep.mubr.bf16.mxu0 %v3482_v44  ;;  %v2162_v44 = vadd.f32 %v3576_v2, %v3572_v61  ;;  %v2171_v61 = vadd.f32 %v3599_v20, %v3597_v62  ;;  %v2174_v2 = vadd.f32 %v2173_v57, %v2172_v6  ;;  %v2124_v57 = vld [vmem:[%s461_s25] ss:$0 sm:$0xff]  ;;  %s3801_s25 = scalar_lea.vmem [#allocation12], %s2055_s9 }
 0x1cb   : > { %s1805_s22 = sshll.u32 %s3801_s25, 4  ;;  %s3844_s22 = int_to_ptr.vmem [resolvable:$true] %s1805_s22 }
 0x1cc   : > { %2362 = vmatpush3.bf16.xpose.msra.mxu1 %v1373_v1  ;;  %v860_v22 = vadd.f32 %v2174_v2, %v3542_v17  ;;  %s2857_s19 = scalar_lea.vmem %s3844_s22, 2048  ;;  %p2864_p0 = scmp.lt.s32.totalorder %s3844_s22, %s2862_s12 }
 0x1cd   : > { %2363 = vmatprep.subr.bf16.mxu1 %v1372_v59  ;;  %p2858_p13 = scmp.ne.s32.totalorder %s3844_s22, %s2857_s19  ;;  %p2865_p1 = scmp.lt.s32.totalorder %s2863_s4, %s2857_s19 }
 0x1cf   : > { %p2859_p11 = pnand %p2858_p13, %p3242_p2  ;;  %p2866_p9 = por %p2865_p1, %p2864_p0 }
 0x1d1   : > { %1343 = vmatmul.mubr.bf16.gmra.mxu0 %v3489_v45  ;;  %v2168_v45 = vadd.f32 %v3589_v37, %v3587_v27  ;;  %v1363_v37 = vpack.c.bf16 %v868_v24, %v865_v23  ;;  %p2860_p3 = pneg %p2859_p11 }
 0x1d2   : > { %1350 = vmatprep.mubr.bf16.mxu0 %v3492_v46  ;;  %v2190_v46 = vpop.f32.mrf.mxu0 }
 0x1d3   : > { %v852_v19 = vadd.f32 %v2168_v45, %v3542_v17  ;;  %p2867_p4 = pnand %p2866_p9, %p2860_p3 }
 0x1d4   : > { %2364 = vmatpush3.bf16.xpose.msra.mxu1 %v1372_v59  ;;  %v2191_v48 = vpop.f32.mrf.mxu0 }
 0x1d5   : > { %2365 = vmatprep.subr.bf16.mxu1 %v1371_v38  ;;  %v2192_v36 = vadd.f32 %v2191_v48, %v2190_v46 }
 0x1d6   : > { %v2193_v18 = vpop.f32.mrf.mxu0 }
 0x1d7   : > { %v884_v58 = vadd.f32 %v2192_v36, %v3542_v17 }
 0x1d8   : > { %v2194_v27 = vpop.f32.mrf.mxu0 }
 0x1d9   : > { %1351 = vmatmul.mubr.bf16.gmra.mxu0 %v3499_v47  ;;  %v849_v47 = vadd.f32 %v2165_v12, %v3542_v17  ;;  %v2195_v0 = vadd.f32 %v2194_v27, %v2193_v18  ;;  %v1365_v20 = vpack.c.bf16 %v884_v58, %v881_v56 }
 0x1da   : > { %v2196_v49 = vpop.f32.mrf.mxu0 }
 0x1db   : > { %v1361_v16 = vpack.c.bf16 %v852_v19, %v849_v47  ;;  %v889_v4 = vadd.f32 %v2195_v0, %v3542_v17 }
 0x1dc   : > { %2366 = vmatpush3.bf16.xpose.msra.mxu1 %v1371_v38  ;;  %v2197_v62 = vpop.f32.mrf.mxu0 }
 0x1dd   : > { %2367 = vmatprep.subr.bf16.mxu1 %v1370_v11  ;;  %v2198_v1 = vadd.f32 %v2197_v62, %v2196_v49 }
 0x1df   : > { %v892_v21 = vadd.f32 %v2198_v1, %v3542_v17 }
 0x1e1   : > { %v1366_v6 = vpack.c.bf16 %v892_v21, %v889_v4 }
 0x1e4   : > { %2368 = vmatpush3.bf16.xpose.msra.mxu1 %v1370_v11 }
 0x1e5   : > { %2369 = vmatprep.subr.bf16.mxu1 %v3538_v14 }
 0x1ec   : > { %2370 = vmatpush3.bf16.xpose.msra.mxu1 %v3538_v14  ;;  %v844_v14 = vadd.f32 %v2162_v44, %v3542_v17 }
 0x1ed   : > { %2371 = vmatprep.subr.bf16.mxu1 %v3526_v5 }
 0x1f4   : > { %2372 = vmatpush3.bf16.xpose.msra.mxu1 %v3526_v5  ;;  %v841_v5 = vadd.f32 %v2159_v43, %v3542_v17 }
 0x1f5   : > { %2373 = vmatprep.subr.bf16.mxu1 %v3522_v60 }
 0x1f6   : > { %v1360_v55 = vpack.c.bf16 %v844_v14, %v841_v5 }
 0x1fc   : > { %2374 = vmatpush3.bf16.xpose.msra.mxu1 %v3522_v60  ;;  %v857_v60 = vadd.f32 %v2171_v61, %v3542_v17 }
 0x1fe   : > { %v1362_v31 = vpack.c.bf16 %v860_v22, %v857_v60 }
 0x203   : > { %2376 = vmatmul.mubr.bf16.vlgmr.msra.gmra.mxu1 %v1360_v55 }
 0x204   : > { %2379 = vmatprep.mubr.bf16.mxu1 %v1361_v16 }
 0x20b   : > { %2380 = vmatmul.mubr.bf16.gmra.mxu1 %v1362_v31 }
 0x20c   : > { %2383 = vmatprep.mubr.bf16.mxu1 %v1363_v37 }
 0x213   : > { %2384 = vmatmul.mubr.bf16.gmra.mxu1 %v1364_v3 }
 0x214   : > { %2387 = vmatprep.mubr.bf16.mxu1 %v1365_v20 }
 0x21b   : > { %2388 = vmatmul.mubr.bf16.gmra.mxu1 %v1366_v6 }
 0x261   : > { %v2279_v7 = vpop.f32.mrf.mxu0 }
 0x263   : > { %v2280_v59 = vpop.f32.mrf.mxu0 }
 0x264   : > { %v3658_v54 = vadd.f32 %v2280_v59, %v2279_v7  ;;  %v2107_v59 = vld [vmem:[%s564_s11] ss:$0 sm:$0xff] }
 0x265   : > { %v3670_v17 = vpop.f32.mrf.mxu0 }
 0x267   : > { %v2283_v34 = vpop.f32.mrf.mxu0 }
 0x268   : > { %v2284_v21 = vadd.f32 %v2283_v34, %v3670_v17 }
 0x269   : > { %v2285_v39 = vpop.f32.mrf.mxu0 }
 0x26b   : > { %v2286_v42 = vpop.f32.mrf.mxu0 }
 0x26c   : > { %v2287_v5 = vadd.f32 %v2286_v42, %v2285_v39 }
 0x26d   : > { %v2288_v44 = vpop.f32.mrf.mxu0 }
 0x26f   : > { %v2289_v14 = vpop.f32.mrf.mxu0 }
 0x270   : > { %v2290_v2 = vadd.f32 %v2289_v14, %v2288_v44 }
 0x271   : > { %v3691_v19 = vpop.f32.mrf.mxu0 }
 0x273   : > { %v3697_v8 = vpop.f32.mrf.mxu0 }
 0x275   : > { %v3701_v16 = vpop.f32.mrf.mxu0 }
 0x277   : > { %v3707_v24 = vpop.f32.mrf.mxu0 }
 0x279   : > { %v2297_v28 = vpop.f32.mrf.mxu0 }
 0x27b   : > { %v2298_v32 = vpop.f32.mrf.mxu0 }
 0x27d   : > { %v2300_v36 = vpop.f32.mrf.mxu0 }
 0x27f   : > { %v2301_v49 = vpop.f32.mrf.mxu0 }
 0x281   : > { %v2303_v50 = vpop.f32.mrf.mxu0 }
 0x283   : > { %v2304_v53 = vpop.f32.mrf.mxu0 }
 0x285   : > { %v2306_v56 = vpop.f32.mrf.mxu0 }
 0x287   : > { %v2307_v58 = vpop.f32.mrf.mxu0 }
 0x289   : > { %v2309_v62 = vpop.f32.mrf.mxu0 }
 0x28b   : > { %v2310_v0 = vpop.f32.mrf.mxu0 }
 0x28c   : > { %v2311_v44 = vadd.f32 %v2310_v0, %v2309_v62  ;;  %v2293_v0 = vadd.f32 %v3697_v8, %v3691_v19 }
 0x28d   : > { %v2312_v1 = vpop.f32.mrf.mxu0 }
 0x28f   : > { %v2313_v3 = vpop.f32.mrf.mxu0 }
 0x291   : > { %v2315_v20 = vpop.f32.mrf.mxu0 }
 0x293   : > { %v2316_v4 = vpop.f32.mrf.mxu0 }
 0x295   : > { %v2318_v6 = vpop.f32.mrf.mxu0 }
 0x297   : > { %v2319_v7 = vpop.f32.mrf.mxu0 }
 0x2c3   : > { %v2377_v26 = vpop.f32.mrf.mxu1 }
 0x2c4   : > { %v3662_v29 = vadd.f32 %v2377_v26, %v2124_v57  ;;  %v1300_v26 = vadd.f32 %v2284_v21, %v2107_v59 }
 0x2c5   : > { %v1415_v63 = vpop.f32.mrf.mxu1 }
 0x2c6   : > { %v3664_v10 = vadd.f32 %v2124_v57, %v1415_v63  ;;  %1482 = vmax.xlane.f32.xlu1 %v3662_v29  ;;  %v1305_v63 = vadd.f32 %v2287_v5, %v2107_v59  ;;  %v1337_v5 = vadd.f32 %v2311_v44, %v2107_v59 }
 0x2c7   : > { %v2378_v38 = vpop.f32.mrf.mxu1 }
 0x2c8   : > { %v3667_v51 = vadd.f32 %v2378_v38, %v2124_v57  ;;  %1478 = vmax.xlane.f32.xlu0 %v3664_v10  ;;  %v1308_v38 = vadd.f32 %v2290_v2, %v2107_v59 }
 0x2c9   : > { %v1418_v25 = vpop.f32.mrf.mxu1 }
 0x2ca   : > { %v3672_v33 = vadd.f32 %v2124_v57, %v1418_v25  ;;  %1484 = vmax.xlane.f32.xlu1 %v3667_v51  ;;  %v2321_v25 = vpop.f32.mrf.mxu0  ;;  %v1647_v42 = vpack.c.bf16 %v1308_v38, %v1305_v63 }
 0x2cb   : > { %v2381_v35 = vpop.f32.mrf.mxu1 }
 0x2cc   : > { %1480 = vmax.xlane.f32.xlu0 %v3672_v33  ;;  %v3679_v52 = vadd.f32 %v2381_v35, %v2124_v57  ;;  %v2322_v35 = vpop.f32.mrf.mxu0 }
 0x2cd   : > { %v1431_v11 = vpop.f32.mrf.mxu1  ;;  %v2323_v39 = vadd.f32 %v2322_v35, %v2321_v25 }
 0x2ce   : > { %v3676_v15 = vadd.f32 %v2124_v57, %v1431_v11  ;;  %v2317_v11 = vadd.f32 %v2316_v4, %v2315_v20  ;;  %v2299_v20 = vadd.f32 %v2298_v32, %v2297_v28  ;;  %v2302_v4 = vadd.f32 %v2301_v49, %v2300_v36 }
 0x2cf   : > { %v2382_v9 = vpop.f32.mrf.mxu1 }
 0x2d0   : > { %1486 = vmax.xlane.f32.xlu0 %v3676_v15  ;;  %v3685_v45 = vadd.f32 %v2382_v9, %v2124_v57  ;;  %v2320_v9 = vadd.f32 %v2319_v7, %v2318_v6  ;;  %v1345_v17 = vadd.f32 %v2317_v11, %v2107_v59 }
 0x2d1   : > { %v1434_v40 = vpop.f32.mrf.mxu1 }
 0x2d2   : > { %v3681_v41 = vadd.f32 %v2124_v57, %v1434_v40  ;;  %v2324_v40 = vpop.f32.mrf.mxu0  ;;  %v1348_v34 = vadd.f32 %v2320_v9, %v2107_v59 }
 0x2d3   : > { %v2385_v43 = vpop.f32.mrf.mxu1 }
 0x2d4   : > { %1488 = vmax.xlane.f32.xlu1 %v3681_v41  ;;  %1490 = vmax.xlane.f32.xlu0 %v3679_v52  ;;  %v3693_v55 = vadd.f32 %v2385_v43, %v2124_v57  ;;  %v2325_v14 = vpop.f32.mrf.mxu0 }
 0x2d5   : > { %v1447_v12 = vpop.f32.mrf.mxu1 }
 0x2d6   : > { %v3687_v46 = vadd.f32 %v2124_v57, %v1447_v12  ;;  %v2314_v12 = vadd.f32 %v2313_v3, %v2312_v1  ;;  %v1313_v1 = vadd.f32 %v2293_v0, %v2107_v59 }
 0x2d7   : > { %v2386_v47 = vpop.f32.mrf.mxu1 }
 0x2d8   : > { %1492 = vmax.xlane.f32.xlu1 %v3685_v45  ;;  %1494 = vmax.xlane.f32.xlu0 %v3687_v46  ;;  %v3703_v60 = vadd.f32 %v2386_v47, %v2124_v57  ;;  %v1353_v47 = vadd.f32 %v2323_v39, %v2107_v59  ;;  %v1340_v2 = vadd.f32 %v2314_v12, %v2107_v59 }
 0x2d9   : > { %v1450_v48 = vpop.f32.mrf.mxu1 }
 0x2da   : > { %v3695_v61 = vadd.f32 %v2124_v57, %v1450_v48  ;;  %v2326_v48 = vadd.f32 %v2325_v14, %v2324_v40  ;;  %v1651_v62 = vpack.c.bf16 %v1340_v2, %v1337_v5 }
 0x2db   : > { %v2389_v13 = vpop.f32.mrf.mxu1 }
 0x2dc   : > { %1496 = vmax.xlane.f32.xlu1 %v3695_v61  ;;  %1498 = vmax.xlane.f32.xlu0 %v3693_v55  ;;  %v3711_v30 = vadd.f32 %v2389_v13, %v2124_v57  ;;  %v1356_v13 = vadd.f32 %v2326_v48, %v2107_v59 }
 0x2dd   : > { %v1463_v18 = vpop.f32.mrf.mxu1 }
 0x2de   : > { %v3705_v22 = vadd.f32 %v2124_v57, %v1463_v18  ;;  %v2308_v18 = vadd.f32 %v2307_v58, %v2306_v56  ;;  %v1324_v56 = vadd.f32 %v2302_v4, %v2107_v59 }
 0x2df   : > { %v2390_v23 = vpop.f32.mrf.mxu1 }
 0x2e0   : > { %1500 = vmax.xlane.f32.xlu1 %v3703_v60  ;;  %1502 = vmax.xlane.f32.xlu0 %v3705_v22  ;;  %v3717_v37 = vadd.f32 %v2390_v23, %v2124_v57  ;;  %v1653_v23 = vpack.c.bf16 %v1356_v13, %v1353_v47  ;;  %v1332_v6 = vadd.f32 %v2308_v18, %v2107_v59 }
 0x2e1   : > { %v1466_v27 = vpop.f32.mrf.mxu1 }
 0x2e2   : > { %v3713_v31 = vadd.f32 %v2124_v57, %v1466_v27  ;;  %v1297_v57 = vadd.f32 %v3658_v54, %v2107_v59  ;;  %v2305_v54 = vadd.f32 %v2304_v53, %v2303_v50  ;;  %v1652_v27 = vpack.c.bf16 %v1348_v34, %v1345_v17  ;;  %2391 = vmatprep.subr.bf16.mxu1 %v1653_v23 }
 0x2e3   : > { %2392 = vmatpush3.bf16.msra.mxu1 %v1653_v23  ;;  %v2296_v50 = vadd.f32 %v3707_v24, %v3701_v16  ;;  %v1321_v53 = vadd.f32 %v2299_v20, %v2107_v59 }
 0x2e4   : > { %1504 = vmax.xlane.f32.xlu1 %v3713_v31  ;;  %1506 = vmax.xlane.f32.xlu0 %v3711_v30  ;;  %v1646_v43 = vpack.c.bf16 %v1300_v26, %v1297_v57  ;;  %v1329_v21 = vadd.f32 %v2305_v54, %v2107_v59 }
 0x2e5   : > { %2393 = vmatprep.subr.bf16.mxu1 %v1652_v27  ;;  %v1316_v28 = vadd.f32 %v2296_v50, %v2107_v59  ;;  %v1649_v32 = vpack.c.bf16 %v1324_v56, %v1321_v53 }
 0x2e6   : > { %v1650_v58 = vpack.c.bf16 %v1332_v6, %v1329_v21 }
 0x2e7   : > { %2394 = vmatpush3.bf16.msra.mxu1 %v1652_v27  ;;  %v1648_v36 = vpack.c.bf16 %v1316_v28, %v1313_v1 }
 0x2e8   : > { %1508 = vmax.xlane.f32.xlu1 %v3717_v37  ;;  %2395 = vmatprep.subr.bf16.mxu1 %v1651_v62 }
 0x2eb   : > { %2396 = vmatpush3.bf16.msra.mxu1 %v1651_v62 }
 0x2ec   : > { %2397 = vmatprep.subr.bf16.mxu1 %v1650_v58 }
 0x2ef   : > { %2398 = vmatpush3.bf16.msra.mxu1 %v1650_v58 }
 0x2f0   : > { %2399 = vmatprep.subr.bf16.mxu1 %v1649_v32 }
 0x2f3   : > { %2400 = vmatpush3.bf16.msra.mxu1 %v1649_v32 }
 0x2f4   : > { %2401 = vmatprep.subr.bf16.mxu1 %v1648_v36 }
 0x2f7   : > { %2402 = vmatpush3.bf16.msra.mxu1 %v1648_v36 }
 0x2f8   : > { %2403 = vmatprep.subr.bf16.mxu1 %v1647_v42 }
 0x2fb   : > { %2404 = vmatpush3.bf16.msra.mxu1 %v1647_v42 }
 0x2fc   : > { %2405 = vmatprep.subr.bf16.mxu1 %v1646_v43 }
 0x2ff   : > { %2406 = vmatpush3.bf16.msra.mxu1 %v1646_v43 }
 0x34f   : > { %v1483_v19 = vpop.xlane.xlu1 %1482 }
 0x350   : > { %v1512_v8 = vsub.f32 %v3662_v29, %v1483_v19 }
 0x351   : > { %v1479_v16 = vpop.xlane.xlu0 %1478 }
 0x352   : > { %v1510_v24 = vsub.f32 %v3664_v10, %v1479_v16  ;;  %v1530_v7 = vmul.f32 1.442695, %v1512_v8 }
 0x353   : > { %v1485_v49 = vpop.xlane.xlu1 %1484 }
 0x354   : > { %v1526_v3 = vmul.f32 1.442695, %v1510_v24  ;;  %v1513_v59 = vsub.f32 %v3667_v51, %v1485_v49 }
 0x355   : > { %v1481_v57 = vpop.xlane.xlu0 %1480 }
 0x356   : > { %2653 = vpow2.f32 %v1526_v3  ;;  %v1511_v26 = vsub.f32 %v3672_v33, %v1481_v57  ;;  %v1532_v38 = vmul.f32 1.442695, %v1513_v59 }
 0x357   : > { %2655 = vpow2.f32 %v1530_v7 }
 0x358   : > { %v1528_v63 = vmul.f32 1.442695, %v1511_v26 }
 0x359   : > { %v1487_v25 = vpop.xlane.xlu0 %1486 }
 0x35a   : > { %2657 = vpow2.f32 %v1528_v63  ;;  %v1514_v35 = vsub.f32 %v3676_v15, %v1487_v25 }
 0x35b   : > { %2659 = vpow2.f32 %v1532_v38 }
 0x35c   : > { %v1534_v29 = vmul.f32 1.442695, %v1514_v35 }
 0x35d   : > { %v1489_v11 = vpop.xlane.xlu1 %1488  ;;  %v1491_v10 = vpop.xlane.xlu0 %1490 }
 0x35e   : > { %2661 = vpow2.f32 %v1534_v29  ;;  %v1515_v9 = vsub.f32 %v3681_v41, %v1489_v11  ;;  %v1516_v51 = vsub.f32 %v3679_v52, %v1491_v10 }
 0x360   : > { %v1536_v39 = vmul.f32 1.442695, %v1515_v9  ;;  %v1538_v40 = vmul.f32 1.442695, %v1516_v51 }
 0x361   : > { %v1493_v42 = vpop.xlane.xlu1 %1492  ;;  %v1495_v33 = vpop.xlane.xlu0 %1494 }
 0x362   : > { %2663 = vpow2.f32 %v1536_v39  ;;  %v1517_v43 = vsub.f32 %v3685_v45, %v1493_v42  ;;  %v1518_v44 = vsub.f32 %v3687_v46, %v1495_v33 }
 0x363   : > { %v3739_v12 = vpop.eup %2653  ;;  %2665 = vpow2.f32 %v1538_v40 }
 0x364   : > { %v1540_v15 = vmul.f32 1.442695, %v1517_v43  ;;  %v1542_v14 = vmul.f32 1.442695, %v1518_v44  ;;  %1558 = vadd.xlane.f32.xlu0 %v3739_v12  ;;  %v3742_v34 = vpop.eup %2655 }
 0x365   : > { %v1497_v17 = vpop.xlane.xlu1 %1496  ;;  %v1499_v41 = vpop.xlane.xlu0 %1498 }
 0x366   : > { %2667 = vpow2.f32 %v1540_v15  ;;  %v1519_v52 = vsub.f32 %v3695_v61, %v1497_v17  ;;  %v1520_v47 = vsub.f32 %v3693_v55, %v1499_v41 }
 0x367   : > { %v3746_v48 = vpop.eup %2657  ;;  %2669 = vpow2.f32 %v1542_v14 }
 0x368   : > { %v1544_v45 = vmul.f32 1.442695, %v1519_v52  ;;  %v1546_v46 = vmul.f32 1.442695, %v1520_v47  ;;  %1562 = vadd.xlane.f32.xlu0 %v3742_v34  ;;  %1560 = vadd.xlane.f32.xlu1 %v3746_v48  ;;  %v3750_v18 = vpop.eup %2659 }
 0x369   : > { %v1501_v13 = vpop.xlane.xlu1 %1500  ;;  %v1503_v54 = vpop.xlane.xlu0 %1502 }
 0x36a   : > { %2671 = vpow2.f32 %v1544_v45  ;;  %v1521_v5 = vsub.f32 %v3703_v60, %v1501_v13  ;;  %v1522_v61 = vsub.f32 %v3705_v22, %v1503_v54 }
 0x36b   : > { %v3754_v2 = vpop.eup %2661  ;;  %2673 = vpow2.f32 %v1546_v46 }
 0x36c   : > { %v1548_v55 = vmul.f32 1.442695, %v1521_v5  ;;  %v1550_v23 = vmul.f32 1.442695, %v1522_v61  ;;  %1564 = vadd.xlane.f32.xlu1 %v3750_v18  ;;  %1566 = vadd.xlane.f32.xlu0 %v3754_v2 }
 0x36d   : > { %v1505_v27 = vpop.xlane.xlu1 %1504  ;;  %v1507_v20 = vpop.xlane.xlu0 %1506 }
 0x36e   : > { %2675 = vpow2.f32 %v1548_v55  ;;  %v1523_v4 = vsub.f32 %v3713_v31, %v1505_v27  ;;  %v1524_v21 = vsub.f32 %v3711_v30, %v1507_v20 }
 0x36f   : > { %v3760_v6 = vpop.eup %2663  ;;  %2677 = vpow2.f32 %v1550_v23 }
 0x370   : > { %v3762_v60 = vpop.eup %2665  ;;  %v1552_v22 = vmul.f32 1.442695, %v1523_v4  ;;  %v1554_v62 = vmul.f32 1.442695, %v1524_v21  ;;  %1568 = vadd.xlane.f32.xlu1 %v3760_v6 }
 0x371   : > { %1570 = vadd.xlane.f32.xlu0 %v3762_v60  ;;  %v1509_v0 = vpop.xlane.xlu1 %1508 }
 0x372   : > { %2679 = vpow2.f32 %v1552_v22  ;;  %v1525_v50 = vsub.f32 %v3717_v37, %v1509_v0 }
 0x373   : > { %v3767_v53 = vpop.eup %2667  ;;  %2681 = vpow2.f32 %v1554_v62 }
 0x374   : > { %v3769_v31 = vpop.eup %2669  ;;  %v1556_v30 = vmul.f32 1.442695, %v1525_v50  ;;  %1572 = vadd.xlane.f32.xlu1 %v3767_v53 }
 0x375   : > { %1574 = vadd.xlane.f32.xlu0 %v3769_v31 }
 0x376   : > { %2683 = vpow2.f32 %v1556_v30 }
 0x377   : > { %v3773_v56 = vpop.eup %2671 }
 0x378   : > { %v3775_v58 = vpop.eup %2673  ;;  %1576 = vadd.xlane.f32.xlu1 %v3773_v56 }
 0x379   : > { %1578 = vadd.xlane.f32.xlu0 %v3775_v58 }
 0x37b   : > { %v3779_v37 = vpop.eup %2675 }
 0x37c   : > { %v3781_v1 = vpop.eup %2677  ;;  %1580 = vadd.xlane.f32.xlu1 %v3779_v37 }
 0x37d   : > { %1582 = vadd.xlane.f32.xlu0 %v3781_v1 }
 0x37f   : > { %v3785_v28 = vpop.eup %2679 }
 0x380   : > { %v3787_v32 = vpop.eup %2681  ;;  %1584 = vadd.xlane.f32.xlu1 %v3785_v28 }
 0x381   : > { %1586 = vadd.xlane.f32.xlu0 %v3787_v32 }
 0x383   : > { %v3791_v36 = vpop.eup %2683 }
 0x384   : > { %1588 = vadd.xlane.f32.xlu1 %v3791_v36 }
 0x3ed   : > { %v1559_v19 = vpop.xlane.xlu0 %1558 }
 0x3ee   : > { %2685 = vrcp.f32 %v1559_v19 }
 0x3f1   : > { %v1561_v8 = vpop.xlane.xlu1 %1560  ;;  %v1563_v16 = vpop.xlane.xlu0 %1562 }
 0x3f2   : > { %2687 = vrcp.f32 %v1561_v8 }
 0x3f3   : > { %2689 = vrcp.f32 %v1563_v16 }
 0x3f5   : > { %v1565_v24 = vpop.xlane.xlu1 %1564  ;;  %v1567_v49 = vpop.xlane.xlu0 %1566 }
 0x3f6   : > { %2691 = vrcp.f32 %v1565_v24 }
 0x3f7   : > { %2693 = vrcp.f32 %v1567_v49 }
 0x3f9   : > { %v1569_v3 = vpop.xlane.xlu1 %1568 }
 0x3fa   : > { %2695 = vrcp.f32 %v1569_v3  ;;  %v1571_v7 = vpop.xlane.xlu0 %1570 }
 0x3fb   : > { %v2686_v59 = vpop.eup %2685  ;;  %2697 = vrcp.f32 %v1571_v7 }
 0x3fc   : > { %v1606_v57 = vmul.f32 %v2686_v59, %v3739_v12 }
 0x3fd   : > { %v1573_v26 = vpop.xlane.xlu1 %1572 }
 0x3fe   : > { %2699 = vrcp.f32 %v1573_v26  ;;  %v1575_v63 = vpop.xlane.xlu0 %1574  ;;  %1622 = vst [vmem:[%s3801_s25] sm:$0xff] %v1606_v57 }
 0x3ff   : > { %v2688_v38 = vpop.eup %2687  ;;  %2701 = vrcp.f32 %v1575_v63 }
 0x400   : > { %v2690_v25 = vpop.eup %2689  ;;  %v1607_v35 = vmul.f32 %v2688_v38, %v3746_v48 }
 0x401   : > { %v1577_v29 = vpop.xlane.xlu1 %1576  ;;  %v1608_v11 = vmul.f32 %v2690_v25, %v3742_v34 }
 0x402   : > { %2703 = vrcp.f32 %v1577_v29  ;;  %v1579_v10 = vpop.xlane.xlu0 %1578  ;;  %1623 = vst [vmem:[%s3801_s25 + $0x8] sm:$0xff] %v1607_v35  ;;  %v1638_v9 = vpack.c.bf16 %v1607_v35, %v1606_v57 }
 0x403   : > { %v2692_v51 = vpop.eup %2691  ;;  %2705 = vrcp.f32 %v1579_v10  ;;  %1624 = vst [vmem:[%s3801_s25 + $0x10] sm:$0xff] %v1608_v11 }
 0x404   : > { %v2694_v39 = vpop.eup %2693  ;;  %2407 = vmatprep.mubr.bf16.mxu1 %v1638_v9  ;;  %v1609_v40 = vmul.f32 %v2692_v51, %v3750_v18 }
 0x405   : > { %v1581_v42 = vpop.xlane.xlu1 %1580  ;;  %v1610_v33 = vmul.f32 %v2694_v39, %v3754_v2 }
 0x406   : > { %2707 = vrcp.f32 %v1581_v42  ;;  %v1583_v43 = vpop.xlane.xlu0 %1582  ;;  %1625 = vst [vmem:[%s3801_s25 + $0x18] sm:$0xff] %v1609_v40  ;;  %v1639_v44 = vpack.c.bf16 %v1609_v40, %v1608_v11 }
 0x407   : > { %v2696_v12 = vpop.eup %2695  ;;  %2709 = vrcp.f32 %v1583_v43  ;;  %1626 = vst [vmem:[%s3801_s25 + $0x20] sm:$0xff] %v1610_v33 }
 0x408   : > { %v2698_v15 = vpop.eup %2697  ;;  %2408 = vmatmul.mubr.bf16.vlgmr.msra.gmra.mxu1 %v1639_v44  ;;  %v1611_v14 = vmul.f32 %v2696_v12, %v3760_v6 }
 0x409   : > { %v1585_v17 = vpop.xlane.xlu1 %1584  ;;  %v1612_v41 = vmul.f32 %v2698_v15, %v3762_v60 }
 0x40a   : > { %2711 = vrcp.f32 %v1585_v17  ;;  %v1587_v34 = vpop.xlane.xlu0 %1586  ;;  %1627 = vst [vmem:[%s3801_s25 + $0x28] sm:$0xff] %v1611_v14  ;;  %v1640_v52 = vpack.c.bf16 %v1611_v14, %v1610_v33 }
 0x40b   : > { %v2700_v47 = vpop.eup %2699  ;;  %2713 = vrcp.f32 %v1587_v34  ;;  %1628 = vst [vmem:[%s3801_s25 + $0x30] sm:$0xff] %v1612_v41 }
 0x40c   : > { %v2702_v48 = vpop.eup %2701  ;;  %2411 = vmatprep.mubr.bf16.mxu1 %v1640_v52  ;;  %v1613_v45 = vmul.f32 %v2700_v47, %v3767_v53 }
 0x40d   : > { %v1589_v46 = vpop.xlane.xlu1 %1588  ;;  %v1614_v13 = vmul.f32 %v2702_v48, %v3769_v31 }
 0x40e   : > { %2715 = vrcp.f32 %v1589_v46  ;;  %1629 = vst [vmem:[%s3801_s25 + $0x38] sm:$0xff] %v1613_v45  ;;  %v1641_v54 = vpack.c.bf16 %v1613_v45, %v1612_v41 }
 0x40f   : > { %v2704_v18 = vpop.eup %2703  ;;  %1630 = vst [vmem:[%s3801_s25 + $0x40] sm:$0xff] %v1614_v13 }
 0x410   : > { %v2706_v5 = vpop.eup %2705  ;;  %2412 = vmatmul.mubr.bf16.gmra.mxu1 %v1641_v54  ;;  %v1615_v61 = vmul.f32 %v2704_v18, %v3773_v56 }
 0x411   : > { %v1616_v2 = vmul.f32 %v2706_v5, %v3775_v58 }
 0x412   : > { %1631 = vst [vmem:[%s3801_s25 + $0x48] sm:$0xff] %v1615_v61  ;;  %v1642_v55 = vpack.c.bf16 %v1615_v61, %v1614_v13 }
 0x413   : > { %v2708_v23 = vpop.eup %2707  ;;  %1632 = vst [vmem:[%s3801_s25 + $0x50] sm:$0xff] %v1616_v2 }
 0x414   : > { %v2710_v27 = vpop.eup %2709  ;;  %2415 = vmatprep.mubr.bf16.mxu1 %v1642_v55  ;;  %v1617_v20 = vmul.f32 %v2708_v23, %v3779_v37 }
 0x415   : > { %v1618_v4 = vmul.f32 %v2710_v27, %v3781_v1 }
 0x416   : > { %1633 = vst [vmem:[%s3801_s25 + $0x58] sm:$0xff] %v1617_v20  ;;  %v1643_v21 = vpack.c.bf16 %v1617_v20, %v1616_v2 }
 0x417   : > { %v2712_v6 = vpop.eup %2711  ;;  %1634 = vst [vmem:[%s3801_s25 + $0x60] sm:$0xff] %v1618_v4 }
 0x418   : > { %v2714_v60 = vpop.eup %2713  ;;  %2416 = vmatmul.mubr.bf16.gmra.mxu1 %v1643_v21  ;;  %v1619_v22 = vmul.f32 %v2712_v6, %v3785_v28 }
 0x419   : > { %v1620_v62 = vmul.f32 %v2714_v60, %v3787_v32 }
 0x41a   : > { %1635 = vst [vmem:[%s3801_s25 + $0x68] sm:$0xff] %v1619_v22  ;;  %v1644_v0 = vpack.c.bf16 %v1619_v22, %v1618_v4 }
 0x41b   : > { %v2716_v50 = vpop.eup %2715  ;;  %1636 = vst [vmem:[%s3801_s25 + $0x70] sm:$0xff] %v1620_v62 }
 0x41c   : > { %2419 = vmatprep.mubr.bf16.mxu1 %v1644_v0  ;;  %v1621_v53 = vmul.f32 %v2716_v50, %v3791_v36 }
 0x41e   : > { %1637 = vst [vmem:[%s3801_s25 + $0x78] sm:$0xff] %v1621_v53  ;;  %v1645_v31 = vpack.c.bf16 %v1621_v53, %v1620_v62 }
 0x420   : > { %2420 = vmatmul.mubr.bf16.gmra.mxu1 %v1645_v31 }
 0x421   : > { %2870 = shalt.err (!%p2867_p4)
}
 0x422   : > { %s2871_s29 = scalar_lea.hbm %s3841_s5, 2048  ;;  %s2875_s7 = scalar_lea.hbm %s4064_s3, 8192 }
 0x423   : > { %p2872_p5 = scmp.ne.s32.totalorder %s3841_s5, %s2871_s29  ;;  %p2876_p8 = scmp.lt.s32.totalorder %s3841_s5, %s4064_s3 }
 0x424   : > { %p2877_p10 = scmp.lt.s32.totalorder %s2875_s7, %s2871_s29 }
 0x425   : > { %p2873_p12 = pnand %p2872_p5, %p3242_p2 }
 0x426   : > { %p2878_p7 = por %p2877_p10, %p2876_p8 }
 0x427   : > { %p2874_p6 = pneg %p2873_p12 }
 0x429   : > { %p2879_p13 = pnand %p2878_p7, %p2874_p6 }
 0x42b   : > { %2882 = shalt.err (!%p2879_p13)
}
 0x42c   : > { %s3055_s25 = smov 128   ;;  %s3056_s20 = smov 8  }
 0x42d   : > { %2434 = dma.vmem_to_hbm [thread:$0]  (%p3242_p2), %s3844_s22, 2048, %s3841_s5, %s1773_s14, %s3055_s25, %s3055_s25, %s3056_s20  }
 0x42e   : > { %s3874_s13 = scalar_lea.vmem [#allocation11], %s2055_s9  ;;  %s1784_s9 = sadd.s32 %s4057_s8, %s2127_s27 }
 0x42f   : > { %s2128_s23 = sshll.u32 %s1784_s9, 7  ;;  %s1787_s18 = sshll.u32 %s3874_s13, 4  ;;  %s3900_s18 = int_to_ptr.vmem [resolvable:$true] %s1787_s18 }
 0x430   : > { %s4065_s22 = sld [smem:[#allocation43_spill]]  ;;  %s1768_s8 = scalar_lea.sflag [#allocation4], %s3795_s17 }
 0x431   : > { %s2883_s1 = scalar_lea.vmem %s3900_s18, 2048  ;;  %s3057_s27 = smov [#allocation11]  }
 0x432   : > { %p2884_p11 = scmp.ne.s32.totalorder %s3900_s18, %s2883_s1  ;;  %s2887_s19 = sshll.u32 %s3057_s27, 4  ;;  %s2888_s19 = int_to_ptr.vmem [resolvable:$false] %s2887_s19 }
 0x433   : > { %s2889_s10 = scalar_lea.vmem %s2888_s19, 4096  ;;  %p2890_p1 = scmp.lt.s32.totalorder %s3900_s18, %s2888_s19 }
 0x434   : > { %p2885_p3 = pnand %p2884_p11, %p3242_p2  ;;  %p2891_p9 = scmp.lt.s32.totalorder %s2889_s10, %s2883_s1 }
 0x436   : > { %s4066_s4 = smov %s4065_s22  ;;  %s3897_s14 = scalar_lea.hbm %s4065_s22, %s2128_s23 }
 0x437   : > { %p2886_p0 = pneg %p2885_p3  ;;  %p2892_p4 = por %p2891_p9, %p2890_p1 }
 0x439   : > { %p2893_p5 = pnand %p2892_p4, %p2886_p0 }
 0x4c8   : > { %v2409_v30 = vpop.f32.mrf.mxu1 }
 0x4c9   : > { %1753 = vst [vmem:[%s3874_s13 + $0x10] sm:$0xff] %v2409_v30 }
 0x4ca   : > { %v1688_v56 = vpop.f32.mrf.mxu1 }
 0x4cb   : > { %1751 = vst [vmem:[%s3874_s13] sm:$0xff] %v1688_v56 }
 0x4cc   : > { %v2410_v58 = vpop.f32.mrf.mxu1 }
 0x4cd   : > { %1754 = vst [vmem:[%s3874_s13 + $0x18] sm:$0xff] %v2410_v58 }
 0x4ce   : > { %v1691_v37 = vpop.f32.mrf.mxu1 }
 0x4cf   : > { %1752 = vst [vmem:[%s3874_s13 + $0x8] sm:$0xff] %v1691_v37 }
 0x4d0   : > { %v2413_v1 = vpop.f32.mrf.mxu1 }
 0x4d1   : > { %1757 = vst [vmem:[%s3874_s13 + $0x30] sm:$0xff] %v2413_v1 }
 0x4d2   : > { %v1704_v28 = vpop.f32.mrf.mxu1 }
 0x4d3   : > { %1755 = vst [vmem:[%s3874_s13 + $0x20] sm:$0xff] %v1704_v28 }
 0x4d4   : > { %v2414_v32 = vpop.f32.mrf.mxu1 }
 0x4d5   : > { %1758 = vst [vmem:[%s3874_s13 + $0x38] sm:$0xff] %v2414_v32 }
 0x4d6   : > { %v1707_v36 = vpop.f32.mrf.mxu1 }
 0x4d7   : > { %1756 = vst [vmem:[%s3874_s13 + $0x28] sm:$0xff] %v1707_v36 }
 0x4d8   : > { %v2417_v19 = vpop.f32.mrf.mxu1 }
 0x4d9   : > { %1761 = vst [vmem:[%s3874_s13 + $0x50] sm:$0xff] %v2417_v19 }
 0x4da   : > { %v1720_v8 = vpop.f32.mrf.mxu1 }
 0x4db   : > { %1759 = vst [vmem:[%s3874_s13 + $0x40] sm:$0xff] %v1720_v8 }
 0x4dc   : > { %v2418_v16 = vpop.f32.mrf.mxu1 }
 0x4dd   : > { %1762 = vst [vmem:[%s3874_s13 + $0x58] sm:$0xff] %v2418_v16 }
 0x4de   : > { %v1723_v24 = vpop.f32.mrf.mxu1 }
 0x4df   : > { %1760 = vst [vmem:[%s3874_s13 + $0x48] sm:$0xff] %v1723_v24 }
 0x4e0   : > { %v2421_v49 = vpop.f32.mrf.mxu1 }
 0x4e1   : > { %1765 = vst [vmem:[%s3874_s13 + $0x70] sm:$0xff] %v2421_v49 }
 0x4e2   : > { %v1736_v3 = vpop.f32.mrf.mxu1 }
 0x4e3   : > { %1763 = vst [vmem:[%s3874_s13 + $0x60] sm:$0xff] %v1736_v3 }
 0x4e4   : > { %v2422_v7 = vpop.f32.mrf.mxu1 }
 0x4e5   : > { %1766 = vst [vmem:[%s3874_s13 + $0x78] sm:$0xff] %v2422_v7 }
 0x4e6   : > { %v1739_v59 = vpop.f32.mrf.mxu1 }
 0x4e7   : > { %1764 = vst [vmem:[%s3874_s13 + $0x68] sm:$0xff] %v1739_v59 }
 0x4e8   : > { %2896 = shalt.err (!%p2893_p5)
}
 0x4e9   : > { %s2897_s12 = scalar_lea.hbm %s3897_s14, 2048  ;;  %s2901_s28 = scalar_lea.hbm %s4066_s4, 8192 }
 0x4ea   : > { %p2898_p12 = scmp.ne.s32.totalorder %s3897_s14, %s2897_s12  ;;  %p2902_p10 = scmp.lt.s32.totalorder %s3897_s14, %s4066_s4 }
 0x4eb   : > { %p2903_p7 = scmp.lt.s32.totalorder %s2901_s28, %s2897_s12 }
 0x4ec   : > { %p2899_p6 = pnand %p2898_p12, %p3242_p2 }
 0x4ed   : > { %p2904_p13 = por %p2903_p7, %p2902_p10 }
 0x4ee   : > { %p2900_p8 = pneg %p2899_p6 }
 0x4f0   : > { %p2905_p11 = pnand %p2904_p13, %p2900_p8 }
 0x4f2   : > { %2908 = shalt.err (!%p2905_p11)
}
 0x4f3   : > { %s3058_s26 = smov 256  }
 0x4f4   : > { %2433 = dma.vmem_to_hbm [thread:$0]  (%p3242_p2), %s3900_s18, 2048, %s3897_s14, %s1768_s8, %s3055_s25, %s3058_s26, %s3056_s20  }
 0x4f5 PF: > { %s4067_s13 = sld [smem:[#allocation29_spill]] }
 0x4f6   : > { %s4068_s9 = sld [smem:[#allocation20_spill]] }
 0x4f7   : > { %s4069_s23 = sld [smem:[#allocation37_spill]] }
 0x4fb   : > { %p2461_p3 = scmp.ge.s32.totalorder %s4067_s13, 2 }
 0x4fc   : > { %s1820_s15 = sand.u32 1, %s4068_s9  }
 0x4fd   : > { %p4070_p0 = scmp.ne.s32.totalorder %s4069_s23, 0  ;;  %s1821_s5 = scalar_lea.sflag [#allocation4], %s1820_s15 }
 0x4ff   : > { %p2454_p1 = pnand %p2461_p3, %p4070_p0 }
 0x501   : > { %p2455_p9 = pneg %p2454_p1 }
 0x503   : > { %2982 = dma.done.wait (%p2455_p9), %s1821_s5, 2048  }
 0x504   : > { %2984 = vsyncadd (%p2455_p9), %s1821_s5, 4294965248  ;;  %s1830_s24 = scalar_lea.sflag [#allocation13], %s1820_s15 }
 0x505   : > { %2986 = dma.done.wait (%p2455_p9), %s1830_s24, 2048  }
 0x506   : > { %2988 = vsyncadd (%p2455_p9), %s1830_s24, 4294965248  ;;  %s35_s22 = sadd.s32 1, %s4067_s13   ;;  %s4072_s30 = sld [smem:[#allocation21_spill]] }
 0x507   : > { %p3933_p4 = scmp.ge.s32.totalorder %s35_s22, 6   ;;  %s4073_s10 = sld [smem:[#allocation22_spill]] }
 0x508   : > { %s4074_s11 = sld [smem:[#allocation35_spill]]  ;;  %s4084_s15 = smov %s3019_s16 }
 0x509   : > { %s4075_s12 = sld [smem:[#allocation23_spill]]  ;;  %s4087_s19 = smov %s3039_s21 }
 0x50a   : > { %s4076_s13 = sld [smem:[#allocation24_spill]] }
 0x50b   : > { %s4077_s14 = sld [smem:[#allocation32_spill]] }
 0x50c   : > { %s4078_s25 = sld [smem:[#allocation25_spill]] }
 0x50d   : > { %s4079_s20 = sld [smem:[#allocation33_spill]] }
 0x50e   : > { %s4080_s18 = sld [smem:[#allocation28_spill]] }
 0x50f   : > { %s4081_s8 = sld [smem:[#allocation30_spill]] }
 0x510   : > { %s4082_s1 = sld [smem:[#allocation31_spill]] }
 0x512   : > { %s4085_s16 = smov %s4078_s25  ;;  %34 = sbr.rel (!%p3933_p4) target bundleno = 24 (0x18), region = 171 }
 0x513   : > { %s4086_s17 = smov %s4079_s20 }
 0x515   : > { %s4088_s20 = smov %s4081_s8 }
 0x516   : > { %s4089_s21 = smov %s4082_s1 }
 0x517   :  { %1835 = vsyncpa [#allocation3], 1 }
 0x518   :  { %1837 = vsyncpa [#allocation3 + $0x1], 1 }
 0x519   :  { %1838 = vsyncpa [#allocation6], 1 }
 0x51a   :  { %1840 = vsyncpa [#allocation6 + $0x1], 1 }
 0x51b   :  { %1841 = vsyncpa [#allocation9], 1 }
 0x51c   :  { %1843 = vsyncpa [#allocation9 + $0x1], 1 }
 0x51d   :  { %1844 = vsyncpa [#allocation4], 1 }
 0x51e   :  { %1846 = vsyncpa [#allocation4 + $0x1], 1 }
 0x51f   :  { %1847 = vsyncpa [#allocation13], 1 }
 0x520   :  { %1849 = vsyncpa [#allocation13 + $0x1], 1 }

</bundles_post_ra>
